<compile_context>
chip_gen: v7x
topology: tpu7x:2x2x1
jax: 0.10.0
libtpu: 0.0.40
codegen_flags: <defaults>
</compile_context>

<pallas_src>
import math

import jax
import jax.numpy as jnp
from jax import lax
from jax.experimental import pallas as pl
from jax.experimental.pallas import tpu as pltpu

# Small, deterministic problem sizes consistent with the module.
B = 2           # batch
T = 8           # sequence length
D_MODEL = 32    # d_model
NHEAD = 4       # nhead
DIM_FF = 64     # dim_feedforward (module default 512; small here)
HEAD_DIM = D_MODEL // NHEAD
D2 = 2 * D_MODEL            # width of the fused [cm | sa] feature axis
NBLK = 2 * NHEAD            # number of (attention-type, head) blocks = 8
LN_EPS = 1e-5
LANES = 128

# Parameter-slab row offsets (all multiples of 8 sublanes).
ROW_WQ_WV = 0                   # rows 0:D2      lanes 0:D2 -> W_qcomb ; lanes D2:2*D2 -> W_vcomb
ROW_WKT_WO = D2                 # rows D2:2*D2   lanes 0:D2 -> W_ktcomb ; lanes D2:D2+D -> W_out_comb
ROW_MASK_W1 = 2 * D2            # rows 2D2:3D2   lanes 0:D2 -> block mask ; rows 2D2:2D2+D lanes D2:D2+FF -> W1^T
ROW_W2 = 3 * D2                 # rows 3D2:3D2+FF lanes 0:D -> W2^T
ROW_BIAS = 3 * D2 + DIM_FF      # 8 aligned rows of biases / LayerNorm params
N_ROWS = ROW_BIAS + 8           # 264


# ---------------------------------------------------------------------------
# In-kernel helpers.
# ---------------------------------------------------------------------------
def _layer_norm(x, gamma, beta):
    mu = jnp.mean(x, axis=-1, keepdims=True)
    var = jnp.mean(jnp.square(x - mu), axis=-1, keepdims=True)
    return (x - mu) * lax.rsqrt(var + LN_EPS) * gamma + beta


# ---------------------------------------------------------------------------
# Pallas kernel: one invocation, whole batch.
#
# bias block layout (8 rows x 128 lanes at ROW_BIAS):
#   row 0: [cm_q_b*scale | sa_q_b*scale]  (D2) | effective out bias (D) | linear2 bias (D)
#   row 1: [linear1 bias (FF) | norm1 gamma (D) | norm1 beta (D)]
#   row 2: [norm2 gamma (D) | norm2 beta (D) | pad]
#   rows 3..7: zero pad
# ---------------------------------------------------------------------------
def han_kernel(x_ref, xt_ref, p_ref, out_ref):
    d, d2, f, t = D_MODEL, D2, DIM_FF, T

    x = x_ref[...]                              # (B*T, 2D): [:, :D]=src_q, [:, D:]=src_v
    xt = xt_ref[...]                            # (2D, B*T): rows 0:D = src_q^T, D:2D = src_v^T
    bias = p_ref[ROW_BIAS:ROW_BIAS + 8, :]      # (8, 128)

    # Fused input projections.  Q scale & bias pre-folded; K bias dropped (softmax is
    # shift-invariant along keys); V bias folded into the effective output bias.
    q_full = jnp.dot(x, p_ref[0:d2, 0:d2],
                     preferred_element_type=jnp.float32) + bias[0:1, 0:d2]      # (B*T, 2D)
    v_full = jnp.dot(x, p_ref[0:d2, d2:2 * d2],
                     preferred_element_type=jnp.float32)                        # (B*T, 2D)
    kt_full = jnp.dot(p_ref[d2:2 * d2, 0:d2], xt,
                      preferred_element_type=jnp.float32)                       # (2D, B*T), K^T

    blk = p_ref[2 * d2:3 * d2, 0:d2]            # (64, 64) 8x8 block-diagonal ones
    w_o = p_ref[d2:2 * d2, d2:d2 + d]           # (2D, D) packed [cm_out^T ; sa_out^T]
    out_bias = bias[0:1, d2:d2 + d]             # effective output bias, added once

    rows = []
    for b in range(B):                          # static unroll, B = 2
        r0 = b * t
        q_b = q_full[r0:r0 + t, :]              # (T, 2D)
        kt_b = kt_full[:, r0:r0 + t]            # (2D, T)
        v_b = v_full[r0:r0 + t, :]              # (T, 2D)

        # Block-diagonal K^T: one matmul gives all 8 (attn-type, head) score blocks.
        k_bd = jnp.concatenate([kt_b] * NBLK, axis=1) * blk                     # (2D, NBLK*T)
        s = jnp.dot(q_b, k_bd, preferred_element_type=jnp.float32)              # (T, 64)

        # One exp over the packed tile; row max is a valid shift for every block.
        prob = jnp.exp(s - jnp.max(s, axis=-1, keepdims=True))
        # Segmented (per-block) row sums broadcast back per lane via the same mask.
        denom = jnp.dot(prob, blk, preferred_element_type=jnp.float32)
        prob = prob * pl.reciprocal(denom, approx=False)                        # exact, EUP

        # Block-diagonal V: one matmul yields [cm heads | sa heads] outputs packed.
        v_bd = jnp.concatenate([v_b] * NBLK, axis=0) * blk                      # (NBLK*T, 2D)
        o = jnp.dot(prob, v_bd, preferred_element_type=jnp.float32)             # (T, 2D)

        # Packed out-projection for both attentions at once + residual + eff. bias.
        attn = jnp.dot(o, w_o, preferred_element_type=jnp.float32)              # (T, D)
        rows.append(x[r0:r0 + t, 0:d] + attn + out_bias)

    x1 = jnp.concatenate(rows, axis=0)          # (B*T, D)

    # norm1
    x1 = _layer_norm(x1, bias[1:2, f:f + d], bias[1:2, f + d:f + 2 * d])

    # feed-forward (dropout = identity)
    hidden = jnp.dot(x1, p_ref[2 * d2:2 * d2 + d, d2:d2 + f],
                     preferred_element_type=jnp.float32) + bias[1:2, 0:f]
    hidden = jnp.maximum(hidden, 0.0)
    ff = jnp.dot(hidden, p_ref[3 * d2:3 * d2 + f, 0:d],
                 preferred_element_type=jnp.float32) + bias[0:1, d2 + d:d2 + 2 * d]

    # norm2
    out_ref[...] = _layer_norm(x1 + ff, bias[2:3, 0:d], bias[2:3, d:2 * d]).astype(out_ref.dtype)


def han_layer(src_q, src_v, slab):
    """src_q, src_v: (B, T, D) float32.  slab: (N_ROWS, 128) packed parameters."""
    b, t, d = src_q.shape
    xq = src_q.reshape(b * t, d)
    xv = src_v.reshape(b * t, d)
    x = jnp.concatenate([xq, xv], axis=1)       # (B*T, 2D)
    xt = x.T                                    # (2D, B*T) — lets the kernel form K^T by matmul
    out = pl.pallas_call(
        han_kernel,
        out_shape=jax.ShapeDtypeStruct((b * t, d), jnp.float32),
        in_specs=[pl.BlockSpec(memory_space=pltpu.MemorySpace.VMEM)] * 3,
        out_specs=pl.BlockSpec(memory_space=pltpu.MemorySpace.VMEM),
        # No grid: whole problem in one invocation.  TODO(synk): for realistic batch
        # sizes add a batch grid axis with dimension_semantics=("parallel",) (v7x's
        # second TensorCore) and keep the output last dim a multiple of 128.
    )(x, xt, slab)
    return out.reshape(b, t, d)


# ---------------------------------------------------------------------------
# Deterministic synthetic parameters in torch layout, plus the packing step.
# ---------------------------------------------------------------------------
def make_params(key):
    ks = jax.random.split(key, 16)

    def w(k, shape, scale=0.1):
        return jax.random.normal(k, shape, jnp.float32) * scale

    d, f = D_MODEL, DIM_FF
    return dict(
        cm_in_w=w(ks[0], (3 * d, d)), cm_in_b=w(ks[1], (3 * d,), 0.02),
        cm_out_w=w(ks[2], (d, d)), cm_out_b=w(ks[3], (d,), 0.02),
        sa_in_w=w(ks[4], (3 * d, d)), sa_in_b=w(ks[5], (3 * d,), 0.02),
        sa_out_w=w(ks[6], (d, d)), sa_out_b=w(ks[7], (d,), 0.02),
        w1=w(ks[8], (f, d)), b1=w(ks[9], (f,), 0.02),
        w2=w(ks[10], (d, f)), b2=w(ks[11], (d,), 0.02),
        g1=1.0 + w(ks[12], (d,), 0.1), be1=w(ks[13], (d,), 0.05),
        g2=1.0 + w(ks[14], (d,), 0.1), be2=w(ks[15], (d,), 0.05),
    )


def pack_params(raw):
    d, d2, f, hd, t = D_MODEL, D2, DIM_FF, HEAD_DIM, T
    # The single shared 8x8 block-indicator mask serves K-blockdiag, V-blockdiag and
    # the segmented softmax sums only because head_dim == seq_len here.
    assert hd == t
    assert d2 <= LANES and d2 + f <= LANES and f + 2 * d <= LANES and d2 + 2 * d <= LANES
    scale = 1.0 / math.sqrt(hd)
    z = jnp.zeros((d, d), jnp.float32)

    cmQ, cmK, cmV = raw["cm_in_w"][0:d], raw["cm_in_w"][d:2 * d], raw["cm_in_w"][2 * d:3 * d]
    saQ, saK, saV = raw["sa_in_w"][0:d], raw["sa_in_w"][d:2 * d], raw["sa_in_w"][2 * d:3 * d]

    # x_comb = [xq | xv]; x_comb_T = [xq^T ; xv^T].
    w_qcomb = jnp.block([[cmQ.T * scale, saQ.T * scale], [z, z]])      # (2D, 2D): Q from xq
    w_vcomb = jnp.block([[z, saV.T], [cmV.T, z]])                      # (2D, 2D): cm_V from xv, sa_V from xq
    w_ktcomb = jnp.block([[z, cmK], [saK, z]])                         # (2D, 2D): cm_K^T from xv^T, sa_K^T from xq^T
    w_ocomb = jnp.concatenate([raw["cm_out_w"].T, raw["sa_out_w"].T], axis=0)   # (2D, D)

    idx = jnp.arange(d2)
    blk = (idx[:, None] // hd == idx[None, :] // t).astype(jnp.float32)         # (2D, 2D)

    bq = jnp.concatenate([raw["cm_in_b"][0:d], raw["sa_in_b"][0:d]]) * scale
    # V biases folded through the out-projections (softmax rows sum to 1).
    out_b_eff = (raw["cm_out_b"] + raw["sa_out_b"]
                 + raw["cm_in_b"][2 * d:3 * d] @ raw["cm_out_w"].T
                 + raw["sa_in_b"][2 * d:3 * d] @ raw["sa_out_w"].T)

    slab = jnp.zeros((N_ROWS, LANES), jnp.float32)
    slab = slab.at[0:d2, 0:d2].set(w_qcomb)
    slab = slab.at[0:d2, d2:2 * d2].set(w_vcomb)
    slab = slab.at[d2:2 * d2, 0:d2].set(w_ktcomb)
    slab = slab.at[d2:2 * d2, d2:d2 + d].set(w_ocomb)
    slab = slab.at[2 * d2:3 * d2, 0:d2].set(blk)
    slab = slab.at[2 * d2:2 * d2 + d, d2:d2 + f].set(raw["w1"].T)
    slab = slab.at[3 * d2:3 * d2 + f, 0:d].set(raw["w2"].T)
    r = ROW_BIAS
    slab = slab.at[r, 0:d2].set(bq)
    slab = slab.at[r, d2:d2 + d].set(out_b_eff)
    slab = slab.at[r, d2 + d:d2 + 2 * d].set(raw["b2"])
    slab = slab.at[r + 1, 0:f].set(raw["b1"])
    slab = slab.at[r + 1, f:f + d].set(raw["g1"])
    slab = slab.at[r + 1, f + d:f + 2 * d].set(raw["be1"])
    slab = slab.at[r + 2, 0:d].set(raw["g2"])
    slab = slab.at[r + 2, d:2 * d].set(raw["be2"])
    return slab


# ---------------------------------------------------------------------------
# Independent pure-JAX reference built directly from the torch-layout params
# (does NOT reuse the kernel math or the packed layout).
# ---------------------------------------------------------------------------
def _ln_ref(x, gamma, beta):
    mu = jnp.mean(x, axis=-1, keepdims=True)
    var = jnp.mean(jnp.square(x - mu), axis=-1, keepdims=True)
    return (x - mu) / jnp.sqrt(var + LN_EPS) * gamma + beta


def _mha_ref(q_in, k_in, v_in, in_w, in_b, out_w, out_b):
    d, nh, hd = D_MODEL, NHEAD, HEAD_DIM
    t = q_in.shape[0]
    q = q_in @ in_w[0:d].T + in_b[0:d]
    k = k_in @ in_w[d:2 * d].T + in_b[d:2 * d]
    v = v_in @ in_w[2 * d:3 * d].T + in_b[2 * d:3 * d]
    q = q * (1.0 / math.sqrt(hd))
    qh = q.reshape(t, nh, hd).transpose(1, 0, 2)
    kh = k.reshape(t, nh, hd).transpose(1, 0, 2)
    vh = v.reshape(t, nh, hd).transpose(1, 0, 2)
    s = jnp.einsum("hqd,hkd->hqk", qh, kh)
    p = jax.nn.softmax(s, axis=-1)
    o = jnp.einsum("hqk,hkd->hqd", p, vh).transpose(1, 0, 2).reshape(t, d)
    return o @ out_w.T + out_b


def han_reference(src_q, src_v, raw):
    def one(xq, xv):
        s1 = _mha_ref(xq, xv, xv, raw["cm_in_w"], raw["cm_in_b"], raw["cm_out_w"], raw["cm_out_b"])
        s2 = _mha_ref(xq, xq, xq, raw["sa_in_w"], raw["sa_in_b"], raw["sa_out_w"], raw["sa_out_b"])
        x = _ln_ref(xq + s1 + s2, raw["g1"], raw["be1"])
        hid = jax.nn.relu(x @ raw["w1"].T + raw["b1"])
        ff = hid @ raw["w2"].T + raw["b2"]
        return _ln_ref(x + ff, raw["g2"], raw["be2"])
    return jax.vmap(one)(src_q, src_v)


if __name__ == "__main__":
    key = jax.random.PRNGKey(0)
    k_q, k_v, k_p = jax.random.split(key, 3)

    src_q = jax.random.normal(k_q, (B, T, D_MODEL), jnp.float32)
    src_v = jax.random.normal(k_v, (B, T, D_MODEL), jnp.float32)
    raw = make_params(k_p)
    slab = pack_params(raw)

    out = jax.block_until_ready(han_layer(src_q, src_v, slab))
    ref = jax.block_until_ready(han_reference(src_q, src_v, raw))

    assert out.shape == (B, T, D_MODEL)
    # Exact (non-approximate) softmax reciprocal is used, so tolerance is tight f32.
    assert jnp.allclose(out, ref, rtol=1e-3, atol=1e-3), "mismatch vs independent pure-JAX reference"

    print("KERNEL_OK")
</pallas_src>

<mosaic_0001>
module attributes {stable_mosaic.version = 11 : i64} {
  func.func @han_kernel(%arg0: memref<16x64xf32, #tpu.memory_space<vmem>>, %arg1: memref<64x16xf32, #tpu.memory_space<vmem>>, %arg2: memref<264x128xf32, #tpu.memory_space<vmem>>, %arg3: memref<16x32xf32, #tpu.memory_space<vmem>>) attributes {dimension_semantics = [], scalar_prefetch = 0 : i64, scratch_operands = 0 : i64, tpu.core_type = #tpu.core_type<tc>} {
    %c0 = arith.constant 0 : index
    %c0_0 = arith.constant 0 : index
    %0 = vector.load %arg0[%c0, %c0_0] : memref<16x64xf32, #tpu.memory_space<vmem>>, vector<16x64xf32>
    %c0_1 = arith.constant 0 : index
    %c0_2 = arith.constant 0 : index
    %1 = vector.load %arg1[%c0_1, %c0_2] : memref<64x16xf32, #tpu.memory_space<vmem>>, vector<64x16xf32>
    %c256 = arith.constant 256 : index
    %c0_3 = arith.constant 0 : index
    %2 = vector.load %arg2[%c256, %c0_3] : memref<264x128xf32, #tpu.memory_space<vmem>>, vector<8x128xf32>
    %c0_4 = arith.constant 0 : index
    %c0_5 = arith.constant 0 : index
    %3 = vector.load %arg2[%c0_4, %c0_5] : memref<264x128xf32, #tpu.memory_space<vmem>>, vector<64x64xf32>
    %cst = arith.constant dense<0.000000e+00> : vector<16x64xf32>
    %4 = tpu.matmul %0, %3, %cst {dimension_numbers = #tpu.dot_dimension_numbers<[1], [0], [0], [1], [0, 0, 1, 1], [], []>} : vector<16x64xf32>, vector<64x64xf32>, vector<16x64xf32> -> vector<16x64xf32>
    %5 = vector.extract_strided_slice %2 {offsets = [0, 0], sizes = [1, 64], strides = [1, 1]} : vector<8x128xf32> to vector<1x64xf32>
    %6 = vector.broadcast %5 : vector<1x64xf32> to vector<16x64xf32>
    %7 = arith.addf %4, %6 : vector<16x64xf32>
    %c0_6 = arith.constant 0 : index
    %c64 = arith.constant 64 : index
    %8 = vector.load %arg2[%c0_6, %c64] : memref<264x128xf32, #tpu.memory_space<vmem>>, vector<64x64xf32>
    %cst_7 = arith.constant dense<0.000000e+00> : vector<16x64xf32>
    %9 = tpu.matmul %0, %8, %cst_7 {dimension_numbers = #tpu.dot_dimension_numbers<[1], [0], [0], [1], [0, 0, 1, 1], [], []>} : vector<16x64xf32>, vector<64x64xf32>, vector<16x64xf32> -> vector<16x64xf32>
    %c64_8 = arith.constant 64 : index
    %c0_9 = arith.constant 0 : index
    %10 = vector.load %arg2[%c64_8, %c0_9] : memref<264x128xf32, #tpu.memory_space<vmem>>, vector<64x64xf32>
    %cst_10 = arith.constant dense<0.000000e+00> : vector<64x16xf32>
    %11 = tpu.matmul %10, %1, %cst_10 {dimension_numbers = #tpu.dot_dimension_numbers<[1], [0], [0], [1], [0, 0, 1, 1], [], []>} : vector<64x64xf32>, vector<64x16xf32>, vector<64x16xf32> -> vector<64x16xf32>
    %c128 = arith.constant 128 : index
    %c0_11 = arith.constant 0 : index
    %12 = vector.load %arg2[%c128, %c0_11] : memref<264x128xf32, #tpu.memory_space<vmem>>, vector<64x64xf32>
    %c64_12 = arith.constant 64 : index
    %c64_13 = arith.constant 64 : index
    %13 = vector.load %arg2[%c64_12, %c64_13] : memref<264x128xf32, #tpu.memory_space<vmem>>, vector<64x32xf32>
    %14 = vector.extract_strided_slice %2 {offsets = [0, 64], sizes = [1, 32], strides = [1, 1]} : vector<8x128xf32> to vector<1x32xf32>
    %15 = vector.extract_strided_slice %7 {offsets = [0, 0], sizes = [8, 64], strides = [1, 1]} : vector<16x64xf32> to vector<8x64xf32>
    %16 = vector.extract_strided_slice %11 {offsets = [0, 0], sizes = [64, 8], strides = [1, 1]} : vector<64x16xf32> to vector<64x8xf32>
    %17 = vector.extract_strided_slice %9 {offsets = [0, 0], sizes = [8, 64], strides = [1, 1]} : vector<16x64xf32> to vector<8x64xf32>
    %18 = tpu.concatenate %16, %16, %16, %16, %16, %16, %16, %16 in 1 : vector<64x8xf32>, vector<64x8xf32>, vector<64x8xf32>, vector<64x8xf32>, vector<64x8xf32>, vector<64x8xf32>, vector<64x8xf32>, vector<64x8xf32> -> vector<64x64xf32>
    %19 = arith.mulf %18, %12 : vector<64x64xf32>
    %cst_14 = arith.constant dense<0.000000e+00> : vector<8x64xf32>
    %20 = tpu.matmul %15, %19, %cst_14 {dimension_numbers = #tpu.dot_dimension_numbers<[1], [0], [0], [1], [0, 0, 1, 1], [], []>} : vector<8x64xf32>, vector<64x64xf32>, vector<8x64xf32> -> vector<8x64xf32>
    %cst_15 = arith.constant dense<0xFF800000> : vector<8xf32>
    %21 = vector.multi_reduction <maximumf>, %20, %cst_15 [1] : vector<8x64xf32> to vector<8xf32>
    %22 = vector.shape_cast %21 : vector<8xf32> to vector<8x1xf32>
    %23 = vector.broadcast %22 : vector<8x1xf32> to vector<8x64xf32>
    %24 = arith.subf %20, %23 : vector<8x64xf32>
    %25 = math.exp %24 : vector<8x64xf32>
    %cst_16 = arith.constant dense<0.000000e+00> : vector<8x64xf32>
    %26 = tpu.matmul %25, %12, %cst_16 {dimension_numbers = #tpu.dot_dimension_numbers<[1], [0], [0], [1], [0, 0, 1, 1], [], []>} : vector<8x64xf32>, vector<64x64xf32>, vector<8x64xf32> -> vector<8x64xf32>
    %27 = tpu.reciprocal %26 : vector<8x64xf32> -> vector<8x64xf32>
    %28 = arith.mulf %25, %27 : vector<8x64xf32>
    %29 = tpu.concatenate %17, %17, %17, %17, %17, %17, %17, %17 in 0 : vector<8x64xf32>, vector<8x64xf32>, vector<8x64xf32>, vector<8x64xf32>, vector<8x64xf32>, vector<8x64xf32>, vector<8x64xf32>, vector<8x64xf32> -> vector<64x64xf32>
    %30 = arith.mulf %29, %12 : vector<64x64xf32>
    %cst_17 = arith.constant dense<0.000000e+00> : vector<8x64xf32>
    %31 = tpu.matmul %28, %30, %cst_17 {dimension_numbers = #tpu.dot_dimension_numbers<[1], [0], [0], [1], [0, 0, 1, 1], [], []>} : vector<8x64xf32>, vector<64x64xf32>, vector<8x64xf32> -> vector<8x64xf32>
    %cst_18 = arith.constant dense<0.000000e+00> : vector<8x32xf32>
    %32 = tpu.matmul %31, %13, %cst_18 {dimension_numbers = #tpu.dot_dimension_numbers<[1], [0], [0], [1], [0, 0, 1, 1], [], []>} : vector<8x64xf32>, vector<64x32xf32>, vector<8x32xf32> -> vector<8x32xf32>
    %33 = vector.extract_strided_slice %0 {offsets = [0, 0], sizes = [8, 32], strides = [1, 1]} : vector<16x64xf32> to vector<8x32xf32>
    %34 = arith.addf %33, %32 : vector<8x32xf32>
    %35 = vector.broadcast %14 : vector<1x32xf32> to vector<8x32xf32>
    %36 = arith.addf %34, %35 : vector<8x32xf32>
    %37 = vector.extract_strided_slice %7 {offsets = [8, 0], sizes = [8, 64], strides = [1, 1]} : vector<16x64xf32> to vector<8x64xf32>
    %38 = vector.extract_strided_slice %11 {offsets = [0, 8], sizes = [64, 8], strides = [1, 1]} : vector<64x16xf32> to vector<64x8xf32>
    %39 = vector.extract_strided_slice %9 {offsets = [8, 0], sizes = [8, 64], strides = [1, 1]} : vector<16x64xf32> to vector<8x64xf32>
    %40 = tpu.concatenate %38, %38, %38, %38, %38, %38, %38, %38 in 1 : vector<64x8xf32>, vector<64x8xf32>, vector<64x8xf32>, vector<64x8xf32>, vector<64x8xf32>, vector<64x8xf32>, vector<64x8xf32>, vector<64x8xf32> -> vector<64x64xf32>
    %41 = arith.mulf %40, %12 : vector<64x64xf32>
    %cst_19 = arith.constant dense<0.000000e+00> : vector<8x64xf32>
    %42 = tpu.matmul %37, %41, %cst_19 {dimension_numbers = #tpu.dot_dimension_numbers<[1], [0], [0], [1], [0, 0, 1, 1], [], []>} : vector<8x64xf32>, vector<64x64xf32>, vector<8x64xf32> -> vector<8x64xf32>
    %cst_20 = arith.constant dense<0xFF800000> : vector<8xf32>
    %43 = vector.multi_reduction <maximumf>, %42, %cst_20 [1] : vector<8x64xf32> to vector<8xf32>
    %44 = vector.shape_cast %43 : vector<8xf32> to vector<8x1xf32>
    %45 = vector.broadcast %44 : vector<8x1xf32> to vector<8x64xf32>
    %46 = arith.subf %42, %45 : vector<8x64xf32>
    %47 = math.exp %46 : vector<8x64xf32>
    %cst_21 = arith.constant dense<0.000000e+00> : vector<8x64xf32>
    %48 = tpu.matmul %47, %12, %cst_21 {dimension_numbers = #tpu.dot_dimension_numbers<[1], [0], [0], [1], [0, 0, 1, 1], [], []>} : vector<8x64xf32>, vector<64x64xf32>, vector<8x64xf32> -> vector<8x64xf32>
    %49 = tpu.reciprocal %48 : vector<8x64xf32> -> vector<8x64xf32>
    %50 = arith.mulf %47, %49 : vector<8x64xf32>
    %51 = tpu.concatenate %39, %39, %39, %39, %39, %39, %39, %39 in 0 : vector<8x64xf32>, vector<8x64xf32>, vector<8x64xf32>, vector<8x64xf32>, vector<8x64xf32>, vector<8x64xf32>, vector<8x64xf32>, vector<8x64xf32> -> vector<64x64xf32>
    %52 = arith.mulf %51, %12 : vector<64x64xf32>
    %cst_22 = arith.constant dense<0.000000e+00> : vector<8x64xf32>
    %53 = tpu.matmul %50, %52, %cst_22 {dimension_numbers = #tpu.dot_dimension_numbers<[1], [0], [0], [1], [0, 0, 1, 1], [], []>} : vector<8x64xf32>, vector<64x64xf32>, vector<8x64xf32> -> vector<8x64xf32>
    %cst_23 = arith.constant dense<0.000000e+00> : vector<8x32xf32>
    %54 = tpu.matmul %53, %13, %cst_23 {dimension_numbers = #tpu.dot_dimension_numbers<[1], [0], [0], [1], [0, 0, 1, 1], [], []>} : vector<8x64xf32>, vector<64x32xf32>, vector<8x32xf32> -> vector<8x32xf32>
    %55 = vector.extract_strided_slice %0 {offsets = [8, 0], sizes = [8, 32], strides = [1, 1]} : vector<16x64xf32> to vector<8x32xf32>
    %56 = arith.addf %55, %54 : vector<8x32xf32>
    %57 = vector.broadcast %14 : vector<1x32xf32> to vector<8x32xf32>
    %58 = arith.addf %56, %57 : vector<8x32xf32>
    %59 = tpu.concatenate %36, %58 in 0 : vector<8x32xf32>, vector<8x32xf32> -> vector<16x32xf32>
    %60 = vector.extract_strided_slice %2 {offsets = [1, 64], sizes = [1, 32], strides = [1, 1]} : vector<8x128xf32> to vector<1x32xf32>
    %61 = vector.extract_strided_slice %2 {offsets = [1, 96], sizes = [1, 32], strides = [1, 1]} : vector<8x128xf32> to vector<1x32xf32>
    %cst_24 = arith.constant dense<0.000000e+00> : vector<16xf32>
    %62 = vector.multi_reduction <add>, %59, %cst_24 [1] : vector<16x32xf32> to vector<16xf32>
    %63 = vector.shape_cast %62 : vector<16xf32> to vector<16x1xf32>
    %cst_25 = arith.constant 3.200000e+01 : f32
    %64 = vector.broadcast %cst_25 : f32 to vector<16x1xf32>
    %65 = arith.divf %63, %64 : vector<16x1xf32>
    %66 = vector.broadcast %65 : vector<16x1xf32> to vector<16x32xf32>
    %67 = arith.subf %59, %66 : vector<16x32xf32>
    %68 = arith.mulf %67, %67 : vector<16x32xf32>
    %cst_26 = arith.constant dense<0.000000e+00> : vector<16xf32>
    %69 = vector.multi_reduction <add>, %68, %cst_26 [1] : vector<16x32xf32> to vector<16xf32>
    %70 = vector.shape_cast %69 : vector<16xf32> to vector<16x1xf32>
    %cst_27 = arith.constant 3.200000e+01 : f32
    %71 = vector.broadcast %cst_27 : f32 to vector<16x1xf32>
    %72 = arith.divf %70, %71 : vector<16x1xf32>
    %73 = vector.broadcast %65 : vector<16x1xf32> to vector<16x32xf32>
    %74 = arith.subf %59, %73 : vector<16x32xf32>
    %cst_28 = arith.constant 9.99999974E-6 : f32
    %75 = vector.broadcast %cst_28 : f32 to vector<16x1xf32>
    %76 = arith.addf %72, %75 : vector<16x1xf32>
    %77 = math.rsqrt %76 : vector<16x1xf32>
    %78 = vector.broadcast %77 : vector<16x1xf32> to vector<16x32xf32>
    %79 = arith.mulf %74, %78 : vector<16x32xf32>
    %80 = vector.broadcast %60 : vector<1x32xf32> to vector<16x32xf32>
    %81 = arith.mulf %79, %80 : vector<16x32xf32>
    %82 = vector.broadcast %61 : vector<1x32xf32> to vector<16x32xf32>
    %83 = arith.addf %81, %82 : vector<16x32xf32>
    %c128_29 = arith.constant 128 : index
    %c64_30 = arith.constant 64 : index
    %84 = vector.load %arg2[%c128_29, %c64_30] : memref<264x128xf32, #tpu.memory_space<vmem>>, vector<32x64xf32>
    %cst_31 = arith.constant dense<0.000000e+00> : vector<16x64xf32>
    %85 = tpu.matmul %83, %84, %cst_31 {dimension_numbers = #tpu.dot_dimension_numbers<[1], [0], [0], [1], [0, 0, 1, 1], [], []>} : vector<16x32xf32>, vector<32x64xf32>, vector<16x64xf32> -> vector<16x64xf32>
    %86 = vector.extract_strided_slice %2 {offsets = [1, 0], sizes = [1, 64], strides = [1, 1]} : vector<8x128xf32> to vector<1x64xf32>
    %87 = vector.broadcast %86 : vector<1x64xf32> to vector<16x64xf32>
    %88 = arith.addf %85, %87 : vector<16x64xf32>
    %cst_32 = arith.constant 0.000000e+00 : f32
    %89 = vector.broadcast %cst_32 : f32 to vector<16x64xf32>
    %90 = arith.maximumf %88, %89 : vector<16x64xf32>
    %c192 = arith.constant 192 : index
    %c0_33 = arith.constant 0 : index
    %91 = vector.load %arg2[%c192, %c0_33] : memref<264x128xf32, #tpu.memory_space<vmem>>, vector<64x32xf32>
    %cst_34 = arith.constant dense<0.000000e+00> : vector<16x32xf32>
    %92 = tpu.matmul %90, %91, %cst_34 {dimension_numbers = #tpu.dot_dimension_numbers<[1], [0], [0], [1], [0, 0, 1, 1], [], []>} : vector<16x64xf32>, vector<64x32xf32>, vector<16x32xf32> -> vector<16x32xf32>
    %93 = vector.extract_strided_slice %2 {offsets = [0, 96], sizes = [1, 32], strides = [1, 1]} : vector<8x128xf32> to vector<1x32xf32>
    %94 = vector.broadcast %93 : vector<1x32xf32> to vector<16x32xf32>
    %95 = arith.addf %92, %94 : vector<16x32xf32>
    %96 = arith.addf %83, %95 : vector<16x32xf32>
    %97 = vector.extract_strided_slice %2 {offsets = [2, 0], sizes = [1, 32], strides = [1, 1]} : vector<8x128xf32> to vector<1x32xf32>
    %98 = vector.extract_strided_slice %2 {offsets = [2, 32], sizes = [1, 32], strides = [1, 1]} : vector<8x128xf32> to vector<1x32xf32>
    %cst_35 = arith.constant dense<0.000000e+00> : vector<16xf32>
    %99 = vector.multi_reduction <add>, %96, %cst_35 [1] : vector<16x32xf32> to vector<16xf32>
    %100 = vector.shape_cast %99 : vector<16xf32> to vector<16x1xf32>
    %cst_36 = arith.constant 3.200000e+01 : f32
    %101 = vector.broadcast %cst_36 : f32 to vector<16x1xf32>
    %102 = arith.divf %100, %101 : vector<16x1xf32>
    %103 = vector.broadcast %102 : vector<16x1xf32> to vector<16x32xf32>
    %104 = arith.subf %96, %103 : vector<16x32xf32>
    %105 = arith.mulf %104, %104 : vector<16x32xf32>
    %cst_37 = arith.constant dense<0.000000e+00> : vector<16xf32>
    %106 = vector.multi_reduction <add>, %105, %cst_37 [1] : vector<16x32xf32> to vector<16xf32>
    %107 = vector.shape_cast %106 : vector<16xf32> to vector<16x1xf32>
    %cst_38 = arith.constant 3.200000e+01 : f32
    %108 = vector.broadcast %cst_38 : f32 to vector<16x1xf32>
    %109 = arith.divf %107, %108 : vector<16x1xf32>
    %110 = vector.broadcast %102 : vector<16x1xf32> to vector<16x32xf32>
    %111 = arith.subf %96, %110 : vector<16x32xf32>
    %cst_39 = arith.constant 9.99999974E-6 : f32
    %112 = vector.broadcast %cst_39 : f32 to vector<16x1xf32>
    %113 = arith.addf %109, %112 : vector<16x1xf32>
    %114 = math.rsqrt %113 : vector<16x1xf32>
    %115 = vector.broadcast %114 : vector<16x1xf32> to vector<16x32xf32>
    %116 = arith.mulf %111, %115 : vector<16x32xf32>
    %117 = vector.broadcast %97 : vector<1x32xf32> to vector<16x32xf32>
    %118 = arith.mulf %116, %117 : vector<16x32xf32>
    %119 = vector.broadcast %98 : vector<1x32xf32> to vector<16x32xf32>
    %120 = arith.addf %118, %119 : vector<16x32xf32>
    %c0_40 = arith.constant 0 : index
    %c0_41 = arith.constant 0 : index
    %121 = vector.load %arg3[%c0_40, %c0_41] : memref<16x32xf32, #tpu.memory_space<vmem>>, vector<16x32xf32>
    tpu.vector_store %arg3[%c0_40, %c0_41], %120 {strides = array<i32>} : memref<16x32xf32, #tpu.memory_space<vmem>>, vector<16x32xf32>,
    return
  }
}

</mosaic_0001>

<bundles_post_ra>
// kernel: tpu_custom_call.1
= control target key start
LH: loop header
LB: loop body
LE: loop exit
PB: predicated region body
PF: predicated region fallthrough
CT: control target
= control target key end

     0   :  { %8 = vsyncpa [#allocation3], 0  ;;  %s3207_s0 = inlined_call_operand.vmem [shape: f32[16,64], index: 0, kind: input, shape index: {}]   ;;  %s3208_s1 = inlined_call_operand.vmem [shape: f32[64,16], index: 1, kind: input, shape index: {}]   ;;  %s3209_s2 = inlined_call_operand.hbm [shape: f32[264,128], index: 2, kind: input, shape index: {}]   ;;  %s3210_s3 = inlined_call_operand.hbm [shape: f32[16,32], index: 3, kind: output, shape index: {}]  }
   0x1   :  { %9 = vsyncpa [#allocation4], 0  ;;  %s2361_s12 = smov [#allocation2]   ;;  %s2313_s16 = scalar_lea.hbm %s3209_s2, 4224 }
   0x2   :  { %s19_s13 = sshll.u32 %s2361_s12, 4  ;;  %p2314_p0 = scmp.ne.s32.totalorder %s3209_s2, %s2313_s16  ;;  %s20_s13 = int_to_ptr.vmem [resolvable:$true] %s19_s13 }
   0x3   :  { %p2317_p1 = scmp.lt.u32.totalorder %s2313_s16, %s3209_s2 }
   0x5   :  { %p2319_p2 = pnand %p2317_p1, %p2314_p0 }
   0x7   :  { %2322 = shalt.err (!%p2319_p2)
}
   0x8   :  { %s2323_s21 = scalar_lea.vmem %s20_s13, 4224  ;;  %p2328_p4 = scmp.lt.s32.totalorder %s20_s13, %s20_s13 }
   0x9   :  { %p2324_p3 = scmp.ne.s32.totalorder %s20_s13, %s2323_s21  ;;  %p2329_p5 = scmp.lt.s32.totalorder %s2323_s21, %s2323_s21 }
   0xb   :  { %p2330_p6 = por %p2329_p5, %p2328_p4 }
   0xd   :  { %p2331_p7 = pnand %p2330_p6, %p2324_p3 }
   0xf   :  { %2334 = shalt.err (!%p2331_p7)
}
  0x10   :  { %s2362_s22 = smov 128   ;;  %s2363_s23 = smov 8  }
  0x11   :  { %25 = dma.hbm_to_vmem [thread:$0]  %s3209_s2, 4224, %s20_s13, [#allocation3], %s2362_s22, %s2362_s22, %s2363_s23  }
  0x12   :  { %2357 = dma.done.wait [#allocation3], 4224  }
  0x13   :  { %2358 = vsyncadd [#allocation3], 4294963072  ;;  %v40_v0 = vld [vmem:[#allocation2] sm:$0xff]  ;;  %v41_v1 = vld [vmem:[#allocation2 + $0x8] sm:$0xff]  ;;  %vm52_vm0 = vcmask 523264   ;;  %s2364_s2 = smov 64  }
  0x14   :  { %v2412_v2 = vld [vmem:[#allocation2 + $0x10] sm:$0xff]  ;;  %v2061_v3 = vpack.c.bf16 %v41_v1, %v40_v0  ;;  %v43_v4 = vld [vmem:[#allocation2 + $0x18] sm:$0xff]  ;;  %v2245_v5 = vpack.i.bf16 %v41_v1, %v40_v0  ;;  %v44_v7 = vld [vmem:[#allocation2 + $0x20] sm:$0xff]  ;;  %s2366_s19 = smov 48   ;;  %s2367_s20 = smov 16   ;;  %v3213_v0 = vmov 0.0|0.0  }
  0x15   :  { %v2065_v6 = vpack.c.bf16 %v43_v4, %v2412_v2  ;;  %v45_v8 = vld [vmem:[#allocation2 + $0x28] sm:$0xff]  ;;  %v29_v9 = vld [vmem:[%s3207_s0] sm:$0xff]  ;;  %v46_v11 = vld [vmem:[#allocation2 + $0x30] sm:$0xff]  ;;  %v2250_v35 = vpack.i.bf16 %v43_v4, %v2412_v2  ;;  %s2368_s21 = smov 56   ;;  %s2369_s24 = smov 24   ;;  %vm2372_vm1 = vmmov 0  }
  0x16   :  { %2062 = vmatprep.subr.bf16.mxu0 %v2061_v3  ;;  %1829 = vmatprep.mubr.msk.f32.mxu0 %vm52_vm0, %v29_v9  ;;  %v2069_v10 = vpack.c.bf16 %v45_v8, %v44_v7  ;;  %v47_v12 = vld [vmem:[#allocation2 + $0x38] sm:$0xff]  ;;  %v31_v14 = vld [vmem:[%s3208_s1] sm:$0xff]  ;;  %v32_v15 = vld [vmem:[%s3208_s1 + $0x8] sm:$0xff]  ;;  %v2255_v36 = vpack.i.bf16 %v45_v8, %v44_v7  ;;  %s2370_s25 = smov 32   ;;  %v3211_v1 = vmov 0.0   ;;  %s2374_s26 = smov 120  }
  0x17   :  { %2064 = vmatpush3.bf16.msra.mxu0 %v2061_v3  ;;  %2246 = vrot.lane.b32.xlu0 %v2245_v5, %s2364_s2  ;;  %v2073_v13 = vpack.c.bf16 %v47_v12, %v46_v11  ;;  %v2093_v16 = vpack.c.bf16 %v32_v15, %v31_v14  ;;  %v33_v17 = vld [vmem:[%s3208_s1 + $0x10] sm:$0xff]  ;;  %v34_v18 = vld [vmem:[%s3208_s1 + $0x18] sm:$0xff]  ;;  %v2436_v19 = vld [vmem:[%s3207_s0 + $0x8] sm:$0xff]  ;;  %v2260_v37 = vpack.i.bf16 %v47_v12, %v46_v11  ;;  %vm562_vm2 = vcmask 64512  }
  0x18   :  { %2066 = vmatprep.subr.bf16.mxu0 %v2065_v6  ;;  %1848 = vmatprep.mubr.msk.f32.mxu1 %vm52_vm0, %v29_v9  ;;  %v2097_v20 = vpack.c.bf16 %v34_v18, %v33_v17  ;;  %v2438_v21 = vld [vmem:[#allocation2 + $0x40] sm:$0xff]  ;;  %v36_v23 = vld [vmem:[%s3208_s1 + $0x28] sm:$0xff]  ;;  %v37_v25 = vld [vmem:[%s3208_s1 + $0x30] sm:$0xff]  ;;  %vm571_vm3 = vcmask 130048   ;;  %vm580_vm4 = vcmask 195584   ;;  %vm589_vm5 = vcmask 261120  }
  0x19   :  { %3244 = vst [vmem:[#allocation8_spill] sm:$0xff] %v2438_v21  ;;  %v35_v22 = vld [vmem:[%s3208_s1 + $0x20] sm:$0xff]  ;;  %v38_v26 = vld [vmem:[%s3208_s1 + $0x38] sm:$0xff]  ;;  %v2456_v28 = vld [vmem:[#allocation2 + $0x48] sm:$0xff]  ;;  %2256 = vrot.lane.b32.xlu1 %v2255_v36, %s2364_s2  ;;  %s2365_s1 = smov 40   ;;  %vm598_vm6 = vcmask 326656  }
  0x1a   :  { %v2101_v24 = vpack.c.bf16 %v36_v23, %v35_v22  ;;  %v2105_v27 = vpack.c.bf16 %v38_v26, %v37_v25  ;;  %3245 = vst [vmem:[#allocation9_spill] sm:$0xff] %v2456_v28  ;;  %v2458_v29 = vld [vmem:[#allocation2 + $0x50] sm:$0xff]  ;;  %v2464_v30 = vld [vmem:[#allocation2 + $0x58] sm:$0xff]  ;;  %v2466_v31 = vld [vmem:[#allocation2 + $0x60] sm:$0xff]  ;;  %vm607_vm7 = vcmask 392192   ;;  %vm616_vm8 = vcmask 457728  }
  0x1b   :  { %2068 = vmatpush3.bf16.msra.mxu0 %v2065_v6  ;;  %3246 = vst [vmem:[#allocation10_spill] sm:$0xff] %v2458_v29  ;;  %3247 = vst [vmem:[#allocation11_spill] sm:$0xff] %v2464_v30  ;;  %v2472_v32 = vld [vmem:[#allocation2 + $0x68] sm:$0xff]  ;;  %v2474_v33 = vld [vmem:[#allocation2 + $0x70] sm:$0xff]  ;;  %2251 = vrot.lane.b32.xlu0 %v2250_v35, %s2364_s2 }
  0x1c   :  { %2070 = vmatprep.subr.bf16.mxu0 %v2069_v10  ;;  %3248 = vst [vmem:[#allocation12_spill] sm:$0xff] %v2466_v31  ;;  %3249 = vst [vmem:[#allocation13_spill] sm:$0xff] %v2472_v32  ;;  %v2480_v34 = vld [vmem:[#allocation2 + $0x78] sm:$0xff]  ;;  %v2693_v36 = vld [vmem:[#allocation2 + $0x80] sm:$0xff] }
  0x1d   :  { %3250 = vst [vmem:[#allocation14_spill] sm:$0xff] %v2474_v33  ;;  %3251 = vst [vmem:[#allocation15_spill] sm:$0xff] %v2480_v34  ;;  %2261 = vrot.lane.b32.xlu1 %v2260_v37, %s2364_s2  ;;  %v2695_v37 = vld [vmem:[#allocation2 + $0x88] sm:$0xff] }
  0x1f   :  { %2072 = vmatpush3.bf16.msra.mxu0 %v2069_v10 }
  0x20   :  { %2074 = vmatprep.subr.bf16.mxu0 %v2073_v13 }
  0x23   :  { %2076 = vmatpush3.bf16.msra.mxu0 %v2073_v13 }
  0x24   :  { %2094 = vmatprep.subr.bf16.mxu0 %v2093_v16 }
  0x26   :  { %1830 = vmatmul.mubr.msk.f32.vlgmr.msra.gmra.mrb[0].mxu0 %vm52_vm0, %v2436_v19 }
  0x27   :  { %2096 = vmatpush3.bf16.msra.mxu0 %v2093_v16  ;;  %1867 = vmatprep.mubr.msk.f32.mxu0 %vm52_vm0, %v2438_v21 }
  0x28   :  { %2098 = vmatprep.subr.bf16.mxu0 %v2097_v20 }
  0x2b   :  { %2100 = vmatpush3.bf16.msra.mxu0 %v2097_v20 }
  0x2c   :  { %2102 = vmatprep.subr.bf16.mxu0 %v2101_v24 }
  0x2f   :  { %2104 = vmatpush3.bf16.msra.mxu0 %v2101_v24 }
  0x30   :  { %2106 = vmatprep.subr.bf16.mxu0 %v2105_v27 }
  0x33   :  { %2108 = vmatpush3.bf16.msra.mxu0 %v2105_v27 }
  0x34   :  { %2121 = vmatprep.subr.bf16.mxu0 %v3213_v0 }
  0x36   :  { %1868 = vmatmul.mubr.msk.f32.vlgmr.msra.gmra.mrb[2].mxu0 %vm52_vm0, %v2456_v28 }
  0x37   :  { %1870 = vmatprep.mubr.msk.f32.mxu0 %vm52_vm0, %v2458_v29 }
  0x3a   :  { %1871 = vmatmul.mubr.msk.f32.gmra.mrb[4].mxu0 %vm52_vm0, %v2464_v30 }
  0x3b   :  { %1873 = vmatprep.mubr.msk.f32.mxu0 %vm52_vm0, %v2466_v31 }
  0x3e   :  { %1874 = vmatmul.mubr.msk.f32.gmra.mrb[6].mxu0 %vm52_vm0, %v2472_v32  ;;  %v2810_v32 = vld [vmem:[#allocation2 + $0xa0] sm:$0xff] }
  0x3f   :  { %1876 = vmatprep.mubr.msk.f32.mxu0 %vm52_vm0, %v2474_v33  ;;  %v2808_v33 = vld [vmem:[#allocation2 + $0xa8] sm:$0xff] }
  0x42   :  { %1877 = vmatmul.mubr.msk.f32.gmra.mrb[8].mxu0 %vm52_vm0, %v2480_v34 }
  0x43   :  { %1914 = vmatprep.mubr.msk.f32.mxu0 %vm2372_vm1, %v3211_v1 }
  0x89   :  { %v2247_v38 = vpop.permute.xlu0 %2246 }
  0x8a   :  { %v2249_v39 = vunpack.i.h.bf16 %v2247_v38  ;;  %v2248_v40 = vunpack.i.l.bf16 %v2247_v38 }
  0x8b   :  { %v2257_v46 = vpop.permute.xlu1 %2256 }
  0x8c   :  { %v2077_v41 = vpack.c.bf16 %v2249_v39, %v2248_v40  ;;  %v2259_v47 = vunpack.i.h.bf16 %v2257_v46  ;;  %v2258_v48 = vunpack.i.l.bf16 %v2257_v46 }
  0x8d   :  { %v2252_v42 = vpop.permute.xlu0 %2251 }
  0x8e   :  { %v2254_v43 = vunpack.i.h.bf16 %v2252_v42  ;;  %v2253_v44 = vunpack.i.l.bf16 %v2252_v42  ;;  %2078 = vmatprep.subr.bf16.mxu1 %v2077_v41  ;;  %v2085_v49 = vpack.c.bf16 %v2259_v47, %v2258_v48 }
  0x8f   :  { %2080 = vmatpush3.bf16.msra.mxu1 %v2077_v41  ;;  %v2262_v50 = vpop.permute.xlu1 %2261 }
  0x90   :  { %v2081_v45 = vpack.c.bf16 %v2254_v43, %v2253_v44  ;;  %v2264_v51 = vunpack.i.h.bf16 %v2262_v50  ;;  %v2263_v52 = vunpack.i.l.bf16 %v2262_v50 }
  0x92   :  { %2082 = vmatprep.subr.bf16.mxu1 %v2081_v45  ;;  %v2089_v54 = vpack.c.bf16 %v2264_v51, %v2263_v52 }
  0x93   :  { %2084 = vmatpush3.bf16.msra.mxu1 %v2081_v45 }
  0x94   :  { %2086 = vmatprep.subr.bf16.mxu1 %v2085_v49 }
  0x97   :  { %2088 = vmatpush3.bf16.msra.mxu1 %v2085_v49 }
  0x98   :  { %2090 = vmatprep.subr.bf16.mxu1 %v2089_v54 }
  0x9b   :  { %2092 = vmatpush3.bf16.msra.mxu1 %v2089_v54 }
  0x9c   :  { %2109 = vmatprep.subr.bf16.mxu1 %v3213_v0 }
  0x9e   :  { %1849 = vmatmul.mubr.msk.f32.vlgmr.msra.gmra.mrb[0].mxu1 %vm52_vm0, %v2436_v19 }
  0x9f   :  { %1895 = vmatprep.mubr.msk.f32.mxu1 %vm2372_vm1, %v3211_v1 }
  0xf9   :  { %v2488_v53 = vpop.f32.mrb[0].mxu0 }
  0xfa   :  { %3252 = vst [vmem:[#allocation16_spill] sm:$0xff] %v2488_v53  ;;  %v2490_v55 = vpop.f32.mrb[1].mxu0 }
 0x109   :  { %v2494_v56 = vpop.f32.mrb[2].mxu0 }
 0x10a   :  { %492 = vrot.lane.b32.xlu1 %v2494_v56, %s2365_s1  ;;  %396 = vrot.lane.b32.xlu0 %v2494_v56, %s2363_s23  ;;  %v2500_v57 = vpop.f32.mrb[3].mxu0 }
 0x10d   :  { %v2502_v58 = vpop.f32.mrb[4].mxu0 }
 0x10e   :  { %516 = vrot.lane.b32.xlu1 %v2494_v56, %s2366_s19  ;;  %420 = vrot.lane.b32.xlu0 %v2494_v56, %s2367_s20  ;;  %v2508_v59 = vpop.f32.mrb[5].mxu0 }
 0x111   :  { %v2510_v60 = vpop.f32.mrb[6].mxu0 }
 0x112   :  { %540 = vrot.lane.b32.xlu1 %v2494_v56, %s2368_s21  ;;  %444 = vrot.lane.b32.xlu0 %v2494_v56, %s2369_s24  ;;  %v2516_v61 = vpop.f32.mrb[7].mxu0 }
 0x115   :  { %v2518_v62 = vpop.f32.mrb[8].mxu0 }
 0x116   :  { %3253 = vst [vmem:[#allocation17_spill] sm:$0xff] %v2518_v62  ;;  %468 = vrot.lane.b32.xlu0 %v2494_v56, %s2370_s25  ;;  %394 = vrot.lane.b32.xlu1 %v2500_v57, %s2363_s23  ;;  %v2524_v63 = vpop.f32.mrb[9].mxu0 }
 0x11a   :  { %490 = vrot.lane.b32.xlu0 %v2500_v57, %s2365_s1  ;;  %418 = vrot.lane.b32.xlu1 %v2500_v57, %s2367_s20 }
 0x11e   :  { %514 = vrot.lane.b32.xlu0 %v2500_v57, %s2366_s19  ;;  %442 = vrot.lane.b32.xlu1 %v2500_v57, %s2369_s24 }
 0x122   :  { %538 = vrot.lane.b32.xlu0 %v2500_v57, %s2368_s21  ;;  %466 = vrot.lane.b32.xlu1 %v2500_v57, %s2370_s25 }
 0x126   :  { %400 = vrot.lane.b32.xlu1 %v2502_v58, %s2363_s23  ;;  %398 = vrot.lane.b32.xlu0 %v2508_v59, %s2363_s23 }
 0x12a   :  { %424 = vrot.lane.b32.xlu1 %v2502_v58, %s2367_s20  ;;  %422 = vrot.lane.b32.xlu0 %v2508_v59, %s2367_s20 }
 0x12e   :  { %448 = vrot.lane.b32.xlu1 %v2502_v58, %s2369_s24  ;;  %446 = vrot.lane.b32.xlu0 %v2508_v59, %s2369_s24 }
 0x132   :  { %472 = vrot.lane.b32.xlu1 %v2502_v58, %s2370_s25  ;;  %470 = vrot.lane.b32.xlu0 %v2508_v59, %s2370_s25 }
 0x136   :  { %496 = vrot.lane.b32.xlu1 %v2502_v58, %s2365_s1  ;;  %494 = vrot.lane.b32.xlu0 %v2508_v59, %s2365_s1 }
 0x13a   :  { %520 = vrot.lane.b32.xlu1 %v2502_v58, %s2366_s19  ;;  %518 = vrot.lane.b32.xlu0 %v2508_v59, %s2366_s19 }
 0x13e   :  { %544 = vrot.lane.b32.xlu1 %v2502_v58, %s2368_s21  ;;  %542 = vrot.lane.b32.xlu0 %v2508_v59, %s2368_s21 }
 0x142   :  { %404 = vrot.lane.b32.xlu1 %v2510_v60, %s2363_s23  ;;  %402 = vrot.lane.b32.xlu0 %v2516_v61, %s2363_s23 }
 0x146   :  { %428 = vrot.lane.b32.xlu1 %v2510_v60, %s2367_s20  ;;  %426 = vrot.lane.b32.xlu0 %v2516_v61, %s2367_s20 }
 0x14a   :  { %452 = vrot.lane.b32.xlu1 %v2510_v60, %s2369_s24  ;;  %450 = vrot.lane.b32.xlu0 %v2516_v61, %s2369_s24 }
 0x14e   :  { %476 = vrot.lane.b32.xlu1 %v2510_v60, %s2370_s25  ;;  %474 = vrot.lane.b32.xlu0 %v2516_v61, %s2370_s25 }
 0x152   :  { %500 = vrot.lane.b32.xlu1 %v2510_v60, %s2365_s1  ;;  %498 = vrot.lane.b32.xlu0 %v2516_v61, %s2365_s1 }
 0x156   :  { %524 = vrot.lane.b32.xlu1 %v2510_v60, %s2366_s19  ;;  %522 = vrot.lane.b32.xlu0 %v2516_v61, %s2366_s19 }
 0x15a   :  { %548 = vrot.lane.b32.xlu1 %v2510_v60, %s2368_s21  ;;  %546 = vrot.lane.b32.xlu0 %v2516_v61, %s2368_s21 }
 0x15e   :  { %408 = vrot.lane.b32.xlu1 %v2518_v62, %s2363_s23  ;;  %406 = vrot.lane.b32.xlu0 %v2524_v63, %s2363_s23 }
 0x162   :  { %432 = vrot.lane.b32.xlu1 %v2518_v62, %s2367_s20  ;;  %430 = vrot.lane.b32.xlu0 %v2524_v63, %s2367_s20 }
 0x166   :  { %456 = vrot.lane.b32.xlu1 %v2518_v62, %s2369_s24  ;;  %454 = vrot.lane.b32.xlu0 %v2524_v63, %s2369_s24 }
 0x16a   :  { %480 = vrot.lane.b32.xlu1 %v2518_v62, %s2370_s25  ;;  %478 = vrot.lane.b32.xlu0 %v2524_v63, %s2370_s25 }
 0x16e   :  { %504 = vrot.lane.b32.xlu1 %v2518_v62, %s2365_s1  ;;  %502 = vrot.lane.b32.xlu0 %v2524_v63, %s2365_s1 }
 0x172   :  { %528 = vrot.lane.b32.xlu1 %v2518_v62, %s2366_s19  ;;  %526 = vrot.lane.b32.xlu0 %v2524_v63, %s2366_s19 }
 0x176   :  { %552 = vrot.lane.b32.xlu1 %v2518_v62, %s2368_s21  ;;  %550 = vrot.lane.b32.xlu0 %v2524_v63, %s2368_s21 }
 0x17a   :  { %971 = vrot.lane.b32.xlu1 %v2500_v57, %s2374_s26 }
 0x17c   :  { %v2630_v2 = vpop.permute.xlu1 %492  ;;  %v2632_v3 = vpop.permute.xlu0 %396 }
 0x17d   :  { %v564_v10 = vsel %vm562_vm2, %v2494_v56, %v2632_v3 }
 0x17e   :  { %973 = vrot.lane.b32.xlu1 %v2494_v56, %s2374_s26 }
 0x180   :  { %v2636_v4 = vpop.permute.xlu1 %516  ;;  %v2638_v5 = vpop.permute.xlu0 %420 }
 0x181   :  { %v573_v11 = vsel %vm571_vm3, %v564_v10, %v2638_v5 }
 0x182   :  { %975 = vrot.lane.b32.xlu1 %v2508_v59, %s2374_s26 }
 0x184   :  { %v541_v6 = vpop.permute.xlu1 %540  ;;  %v2642_v7 = vpop.permute.xlu0 %444 }
 0x185   :  { %v582_v12 = vsel %vm580_vm4, %v573_v11, %v2642_v7 }
 0x186   :  { %977 = vrot.lane.b32.xlu1 %v2502_v58, %s2374_s26 }
 0x188   :  { %v2646_v8 = vpop.permute.xlu0 %468  ;;  %v2648_v9 = vpop.permute.xlu1 %394 }
 0x189   :  { %v591_v15 = vsel %vm589_vm5, %v582_v12, %v2646_v8  ;;  %v563_v19 = vsel %vm562_vm2, %v2500_v57, %v2648_v9 }
 0x18a   :  { %979 = vrot.lane.b32.xlu1 %v2516_v61, %s2374_s26  ;;  %v600_v16 = vsel %vm598_vm6, %v591_v15, %v2630_v2 }
 0x18b   :  { %v609_v20 = vsel %vm607_vm7, %v600_v16, %v2636_v4 }
 0x18c   :  { %v2659_v13 = vpop.permute.xlu0 %490  ;;  %v2661_v14 = vpop.permute.xlu1 %418  ;;  %v618_v27 = vsel %vm616_vm8, %v609_v20, %v541_v6 }
 0x18d   :  { %v572_v22 = vsel %vm571_vm3, %v563_v19, %v2661_v14  ;;  %v626_v43 = vmul.f32 %v618_v27, %v2695_v37  ;;  %v2751_v27 = vld [vmem:[#allocation2 + $0x90] sm:$0xff] }
 0x18e   :  { %981 = vrot.lane.b32.xlu1 %v2510_v60, %s2374_s26 }
 0x190   :  { %v2669_v17 = vpop.permute.xlu0 %514  ;;  %v2671_v18 = vpop.permute.xlu1 %442 }
 0x191   :  { %v581_v23 = vsel %vm580_vm4, %v572_v22, %v2671_v18 }
 0x192   :  { %983 = vrot.lane.b32.xlu1 %v2524_v63, %s2374_s26 }
 0x194   :  { %v539_v24 = vpop.permute.xlu0 %538  ;;  %v2684_v25 = vpop.permute.xlu1 %466 }
 0x195   :  { %v590_v26 = vsel %vm589_vm5, %v581_v23, %v2684_v25 }
 0x196   :  { %v599_v35 = vsel %vm598_vm6, %v590_v26, %v2659_v13  ;;  %985 = vrot.lane.b32.xlu1 %v2518_v62, %s2374_s26  ;;  %v2749_v26 = vld [vmem:[#allocation2 + $0x98] sm:$0xff] }
 0x197   :  { %v608_v38 = vsel %vm607_vm7, %v599_v35, %v2669_v17 }
 0x198   :  { %v617_v39 = vsel %vm616_vm8, %v608_v38, %v539_v24  ;;  %v2700_v40 = vpop.permute.xlu1 %400  ;;  %v2702_v41 = vpop.permute.xlu0 %398 }
 0x199   :  { %v625_v42 = vmul.f32 %v617_v39, %v2693_v36  ;;  %v566_v54 = vsel %vm562_vm2, %v2502_v58, %v2700_v40  ;;  %v565_v6 = vsel %vm562_vm2, %v2508_v59, %v2702_v41 }
 0x19b   :  { %v2110_v44 = vpack.c.bf16 %v626_v43, %v625_v42 }
 0x19c   :  { %v2706_v45 = vpop.permute.xlu1 %424  ;;  %v2708_v46 = vpop.permute.xlu0 %422 }
 0x19d   :  { %2111 = vmatpush3.bf16.msra.mxu1 %v2110_v44  ;;  %v575_v10 = vsel %vm571_vm3, %v566_v54, %v2706_v45  ;;  %v574_v11 = vsel %vm571_vm3, %v565_v6, %v2708_v46 }
 0x19e   :  { %2112 = vmatprep.subr.bf16.mxu1 %v3213_v0 }
 0x1a0   :  { %v2711_v47 = vpop.permute.xlu1 %448  ;;  %v2713_v48 = vpop.permute.xlu0 %446 }
 0x1a1   :  { %v584_v16 = vsel %vm580_vm4, %v575_v10, %v2711_v47  ;;  %v583_v19 = vsel %vm580_vm4, %v574_v11, %v2713_v48 }
 0x1a4   :  { %v2715_v49 = vpop.permute.xlu1 %472  ;;  %v2717_v50 = vpop.permute.xlu0 %470 }
 0x1a5   :  { %v593_v20 = vsel %vm589_vm5, %v584_v16, %v2715_v49  ;;  %v592_v22 = vsel %vm589_vm5, %v583_v19, %v2717_v50 }
 0x1a8   :  { %v2719_v51 = vpop.permute.xlu1 %496  ;;  %v2721_v52 = vpop.permute.xlu0 %494 }
 0x1a9   :  { %v602_v23 = vsel %vm598_vm6, %v593_v20, %v2719_v51  ;;  %v601_v24 = vsel %vm598_vm6, %v592_v22, %v2721_v52 }
 0x1ac   :  { %v2733_v12 = vpop.permute.xlu1 %520  ;;  %v2735_v15 = vpop.permute.xlu0 %518 }
 0x1ad   :  { %v611_v35 = vsel %vm607_vm7, %v602_v23, %v2733_v12  ;;  %v610_v38 = vsel %vm607_vm7, %v601_v24, %v2735_v15 }
 0x1b0   :  { %v545_v39 = vpop.permute.xlu1 %544  ;;  %v543_v42 = vpop.permute.xlu0 %542 }
 0x1b1   :  { %v620_v43 = vsel %vm616_vm8, %v611_v35, %v545_v39  ;;  %v619_v44 = vsel %vm616_vm8, %v610_v38, %v543_v42 }
 0x1b2   :  { %v628_v54 = vmul.f32 %v620_v43, %v2749_v26  ;;  %v627_v6 = vmul.f32 %v619_v44, %v2751_v27 }
 0x1b4   :  { %v2113_v10 = vpack.c.bf16 %v628_v54, %v627_v6  ;;  %v2761_v11 = vpop.permute.xlu1 %404  ;;  %v2763_v16 = vpop.permute.xlu0 %402 }
 0x1b5   :  { %v568_v42 = vsel %vm562_vm2, %v2510_v60, %v2761_v11  ;;  %v567_v43 = vsel %vm562_vm2, %v2516_v61, %v2763_v16 }
 0x1b6   :  { %2114 = vmatpush3.bf16.msra.mxu1 %v2113_v10 }
 0x1b7   :  { %2115 = vmatprep.subr.bf16.mxu1 %v3213_v0 }
 0x1b8   :  { %v2766_v19 = vpop.permute.xlu1 %428  ;;  %v2768_v20 = vpop.permute.xlu0 %426 }
 0x1b9   :  { %3254 = vst [vmem:[#allocation18_spill] sm:$0xff] %v2766_v19  ;;  %v577_v44 = vsel %vm571_vm3, %v568_v42, %v2766_v19  ;;  %v576_v54 = vsel %vm571_vm3, %v567_v43, %v2768_v20 }
 0x1bc   :  { %v2770_v22 = vpop.permute.xlu1 %452  ;;  %v2772_v23 = vpop.permute.xlu0 %450 }
 0x1bd   :  { %3255 = vst [vmem:[#allocation19_spill] sm:$0xff] %v2770_v22  ;;  %v586_v1 = vsel %vm580_vm4, %v577_v44, %v2770_v22  ;;  %v585_v0 = vsel %vm580_vm4, %v576_v54, %v2772_v23 }
 0x1c0   :  { %v2774_v24 = vpop.permute.xlu1 %476  ;;  %v2776_v35 = vpop.permute.xlu0 %474 }
 0x1c1   :  { %3256 = vst [vmem:[#allocation20_spill] sm:$0xff] %v2774_v24  ;;  %v595_v53 = vsel %vm589_vm5, %v586_v1, %v2774_v24  ;;  %v594_v34 = vsel %vm589_vm5, %v585_v0, %v2776_v35 }
 0x1c4   :  { %v2778_v38 = vpop.permute.xlu1 %500  ;;  %v2780_v39 = vpop.permute.xlu0 %498 }
 0x1c5   :  { %3257 = vst [vmem:[#allocation21_spill] sm:$0xff] %v2778_v38  ;;  %3258 = vst [vmem:[#allocation22_spill] sm:$0xff] %v2780_v39  ;;  %v604_v42 = vsel %vm598_vm6, %v595_v53, %v2778_v38  ;;  %v603_v43 = vsel %vm598_vm6, %v594_v34, %v2780_v39 }
 0x1c8   :  { %v2792_v6 = vpop.permute.xlu1 %524  ;;  %v2794_v10 = vpop.permute.xlu0 %522 }
 0x1c9   :  { %3259 = vst [vmem:[#allocation23_spill] sm:$0xff] %v2792_v6  ;;  %3260 = vst [vmem:[#allocation24_spill] sm:$0xff] %v2794_v10  ;;  %v613_v44 = vsel %vm607_vm7, %v604_v42, %v2792_v6  ;;  %v612_v54 = vsel %vm607_vm7, %v603_v43, %v2794_v10  ;;  %v3263_v42 = vmov 0.0|0.0   ;;  %v2825_v6 = vpop.f32.mrb[0].mxu1 }
 0x1ca   :  { %3264 = vst [vmem:[#allocation27_spill] sm:$0xff] %v2825_v6 }
 0x1cc   :  { %v549_v1 = vpop.permute.xlu1 %548  ;;  %v547_v31 = vpop.permute.xlu0 %546 }
 0x1cd   :  { %v622_v0 = vsel %vm616_vm8, %v613_v44, %v549_v1  ;;  %v621_v30 = vsel %vm616_vm8, %v612_v54, %v547_v31  ;;  %v2831_v44 = vpop.f32.mrb[1].mxu1 }
 0x1ce   :  { %v630_v53 = vmul.f32 %v622_v0, %v2808_v33  ;;  %v629_v34 = vmul.f32 %v621_v30, %v2810_v32  ;;  %v48_v0 = vlaneseq }
 0x1d0   :  { %v2116_v29 = vpack.c.bf16 %v630_v53, %v629_v34  ;;  %v2820_v28 = vpop.permute.xlu1 %408  ;;  %v2822_v21 = vpop.permute.xlu0 %406  ;;  %v2845_v34 = vshrl.u32 %v48_v0, 7 }
 0x1d1   :  { %3261 = vst [vmem:[#allocation25_spill] sm:$0xff] %v2820_v28  ;;  %3262 = vst [vmem:[#allocation26_spill] sm:$0xff] %v2822_v21  ;;  %v570_v6 = vsel %vm562_vm2, %v2518_v62, %v2820_v28  ;;  %v569_v24 = vsel %vm562_vm2, %v2524_v63, %v2822_v21 }
 0x1d2   :  { %2117 = vmatpush3.bf16.msra.mxu1 %v2116_v29  ;;  %3272 = vst [vmem:[#allocation35_spill] sm:$0xff] %v2845_v34 }
 0x1d3   :  { %2118 = vmatprep.subr.bf16.mxu1 %v3263_v42 }
 0x1d4   :  { %v2827_v43 = vpop.permute.xlu1 %432  ;;  %v2829_v38 = vpop.permute.xlu0 %430 }
 0x1d5   :  { %3265 = vst [vmem:[#allocation28_spill] sm:$0xff] %v2827_v43  ;;  %3266 = vst [vmem:[#allocation29_spill] sm:$0xff] %v2829_v38  ;;  %v579_v22 = vsel %vm571_vm3, %v570_v6, %v2827_v43  ;;  %v578_v10 = vsel %vm571_vm3, %v569_v24, %v2829_v38  ;;  %v50_v6 = vsub.s32 0, %v2845_v34  ;;  %v2874_v38 = vld [vmem:[#allocation2 + $0xb8] sm:$0xff] }
 0x1d8   :  { %v2833_v31 = vpop.permute.xlu1 %456  ;;  %v2835_v54 = vpop.permute.xlu0 %454 }
 0x1d9   :  { %3267 = vst [vmem:[#allocation30_spill] sm:$0xff] %v2833_v31  ;;  %v588_v0 = vsel %vm580_vm4, %v579_v22, %v2833_v31  ;;  %v587_v28 = vsel %vm580_vm4, %v578_v10, %v2835_v54  ;;  %v2876_v22 = vld [vmem:[#allocation2 + $0xb0] sm:$0xff]  ;;  %v2878_v31 = vld [vmem:[#allocation2 + $0x100] sm:$0xff] }
 0x1dc   :  { %v2837_v30 = vpop.permute.xlu1 %480  ;;  %v2839_v1 = vpop.permute.xlu0 %478 }
 0x1dd   :  { %3268 = vst [vmem:[#allocation31_spill] sm:$0xff] %v2837_v30  ;;  %3269 = vst [vmem:[#allocation32_spill] sm:$0xff] %v2839_v1  ;;  %v597_v62 = vsel %vm589_vm5, %v588_v0, %v2837_v30  ;;  %v596_v21 = vsel %vm589_vm5, %v587_v28, %v2839_v1  ;;  %v788_v1 = vmul.f32 %v2695_v37, %v2831_v44 }
 0x1e0   :  { %v2841_v29 = vpop.permute.xlu1 %504  ;;  %v2843_v53 = vpop.permute.xlu0 %502 }
 0x1e1   :  { %3270 = vst [vmem:[#allocation33_spill] sm:$0xff] %v2841_v29  ;;  %3271 = vst [vmem:[#allocation34_spill] sm:$0xff] %v2843_v53  ;;  %v606_v24 = vsel %vm598_vm6, %v597_v62, %v2841_v29  ;;  %v605_v43 = vsel %vm598_vm6, %v596_v21, %v2843_v53  ;;  %v787_v53 = vmul.f32 %v2693_v36, %v2831_v44 }
 0x1e4   :  { %v2857_v19 = vpop.permute.xlu1 %528  ;;  %v2859_v39 = vpop.permute.xlu0 %526 }
 0x1e5   :  { %3273 = vst [vmem:[#allocation36_spill] sm:$0xff] %v2857_v19  ;;  %v615_v10 = vsel %vm607_vm7, %v606_v24, %v2857_v19  ;;  %v614_v28 = vsel %vm607_vm7, %v605_v43, %v2859_v39  ;;  %v2893_v24 = vrot.slane %v2878_v31, %v50_v6 }
 0x1e7   :  { %v126_v6 = vadd.f32 %v2490_v55, %v2893_v24  ;;  %v791_v55 = vmul.f32 %v2810_v32, %v2831_v44 }
 0x1e8   :  { %v553_v0 = vpop.permute.xlu1 %552  ;;  %v551_v34 = vpop.permute.xlu0 %550 }
 0x1e9   :  { %v624_v30 = vsel %vm616_vm8, %v615_v10, %v553_v0  ;;  %v623_v62 = vsel %vm616_vm8, %v614_v28, %v551_v34  ;;  %v789_v28 = vmul.f32 %v2751_v27, %v2831_v44  ;;  %v790_v0 = vmul.f32 %v2749_v26, %v2831_v44 }
 0x1ea   :  { %v632_v21 = vmul.f32 %v624_v30, %v2874_v38  ;;  %v631_v29 = vmul.f32 %v623_v62, %v2876_v22  ;;  %v2134_v30 = vpack.c.bf16 %v788_v1, %v787_v53  ;;  %v3274_v62 = vmov 0.0  }
 0x1ec   :  { %v2119_v43 = vpack.c.bf16 %v632_v21, %v631_v29  ;;  %v972_v19 = vpop.permute.xlu1 %971 }
 0x1ed   :  { %v995_v10 = vsel %vm562_vm2, %v972_v19, %v2500_v57 }
 0x1ee   :  { %v1003_v34 = vsel %vm571_vm3, %v995_v10, %v2648_v9  ;;  %2120 = vmatpush3.bf16.msra.mxu1 %v2119_v43 }
 0x1ef   :  { %v1011_v29 = vsel %vm580_vm4, %v1003_v34, %v2661_v14  ;;  %2133 = vmatprep.subr.bf16.mxu1 %v3263_v42  ;;  %v792_v14 = vmul.f32 %v2808_v33, %v2831_v44  ;;  %v793_v34 = vmul.f32 %v2876_v22, %v2831_v44 }
 0x1f0   :  { %v1019_v57 = vsel %vm589_vm5, %v1011_v29, %v2671_v18  ;;  %v974_v9 = vpop.permute.xlu1 %973  ;;  %v2137_v18 = vpack.c.bf16 %v790_v0, %v789_v28 }
 0x1f1   :  { %v1027_v19 = vsel %vm598_vm6, %v1019_v57, %v2684_v25  ;;  %v996_v1 = vsel %vm562_vm2, %v974_v9, %v2494_v56  ;;  %1896 = vmatmul.mubr.msk.f32.vlgmr.msra.gmra.mrb[2].mxu1 %vm52_vm0, %v126_v6 }
 0x1f2   :  { %v1004_v53 = vsel %vm571_vm3, %v996_v1, %v2632_v3  ;;  %2135 = vmatpush3.bf16.msra.mxu1 %v2134_v30  ;;  %1933 = vmatprep.mubr.msk.f32.mxu1 %vm2372_vm1, %v3274_v62  ;;  %v1035_v25 = vsel %vm607_vm7, %v1027_v19, %v2659_v13  ;;  %v2140_v30 = vpack.c.bf16 %v792_v14, %v791_v55 }
 0x1f3   :  { %v1012_v56 = vsel %vm580_vm4, %v1004_v53, %v2638_v5  ;;  %2136 = vmatprep.subr.bf16.mxu1 %v3263_v42  ;;  %v1043_v13 = vsel %vm616_vm8, %v1035_v25, %v2669_v17  ;;  %v3276_v53 = vld [vmem:[#allocation18_spill] sm:$0xff]  ;;  %v3277_v25 = vld [vmem:[#allocation24_spill] sm:$0xff] }
 0x1f4   :  { %v1020_v21 = vsel %vm589_vm5, %v1012_v56, %v2642_v7  ;;  %v976_v43 = vpop.permute.xlu1 %975  ;;  %v794_v7 = vmul.f32 %v2874_v38, %v2831_v44  ;;  %v2952_v0 = vmul.f32 %v1043_v13, %v2693_v36  ;;  %v3281_v13 = vld [vmem:[#allocation21_spill] sm:$0xff] }
 0x1f5   :  { %v1028_v3 = vsel %vm598_vm6, %v1020_v21, %v2646_v8  ;;  %v997_v10 = vsel %vm562_vm2, %v976_v43, %v2508_v59  ;;  %v3278_v21 = vld [vmem:[#allocation19_spill] sm:$0xff] }
 0x1f6   :  { %v1005_v5 = vsel %vm571_vm3, %v997_v10, %v2702_v41  ;;  %2138 = vmatpush3.bf16.msra.mxu1 %v2137_v18  ;;  %v1036_v8 = vsel %vm607_vm7, %v1028_v3, %v2630_v2  ;;  %v3280_v10 = vld [vmem:[#allocation26_spill] sm:$0xff] }
 0x1f7   :  { %v1013_v59 = vsel %vm580_vm4, %v1005_v5, %v2708_v46  ;;  %2139 = vmatprep.subr.bf16.mxu1 %v3263_v42  ;;  %v1044_v28 = vsel %vm616_vm8, %v1036_v8, %v2636_v4  ;;  %v2143_v4 = vpack.c.bf16 %v794_v7, %v793_v34  ;;  %v3283_v8 = vld [vmem:[#allocation23_spill] sm:$0xff] }
 0x1f8   :  { %v1021_v17 = vsel %vm589_vm5, %v1013_v59, %v2713_v48  ;;  %v978_v41 = vpop.permute.xlu1 %977  ;;  %v2955_v44 = vmul.f32 %v1044_v28, %v2695_v37 }
 0x1f9   :  { %v1029_v2 = vsel %vm598_vm6, %v1021_v17, %v2717_v50  ;;  %v998_v46 = vsel %vm562_vm2, %v978_v41, %v2502_v58 }
 0x1fa   :  { %v1006_v6 = vsel %vm571_vm3, %v998_v46, %v2700_v40  ;;  %2141 = vmatpush3.bf16.msra.mxu1 %v2140_v30  ;;  %v2158_v48 = vpack.c.bf16 %v2955_v44, %v2952_v0  ;;  %v1037_v29 = vsel %vm607_vm7, %v1029_v2, %v2721_v52  ;;  %v3282_v30 = vld [vmem:[#allocation29_spill] sm:$0xff]  ;;  %v3284_v2 = vld [vmem:[#allocation32_spill] sm:$0xff] }
 0x1fb   :  { %v1014_v57 = vsel %vm580_vm4, %v1006_v6, %v2706_v45  ;;  %2142 = vmatprep.subr.bf16.mxu1 %v3263_v42  ;;  %v1045_v19 = vsel %vm616_vm8, %v1037_v29, %v2735_v15  ;;  %v3285_v6 = vld [vmem:[#allocation17_spill] sm:$0xff]  ;;  %v3302_v44 = vld [vmem:[#allocation16_spill] sm:$0xff] }
 0x1fc   :  { %v1022_v50 = vsel %vm589_vm5, %v1014_v57, %v2711_v47  ;;  %v980_v58 = vpop.permute.xlu1 %979  ;;  %v2990_v15 = vmul.f32 %v1045_v19, %v2751_v27  ;;  %v3286_v29 = vld [vmem:[#allocation25_spill] sm:$0xff] }
 0x1fd   :  { %v1030_v40 = vsel %vm598_vm6, %v1022_v50, %v2715_v49  ;;  %v999_v9 = vsel %vm562_vm2, %v980_v58, %v2516_v61  ;;  %v3287_v58 = vld [vmem:[#allocation34_spill] sm:$0xff] }
 0x1fe   :  { %v1007_v52 = vsel %vm571_vm3, %v999_v9, %v2763_v16  ;;  %2144 = vmatpush3.bf16.msra.mxu1 %v2143_v4  ;;  %v1038_v45 = vsel %vm607_vm7, %v1030_v40, %v2719_v51  ;;  %v3288_v9 = vld [vmem:[#allocation28_spill] sm:$0xff] }
 0x1ff   :  { %v1015_v47 = vsel %vm580_vm4, %v1007_v52, %v2768_v20  ;;  %2157 = vmatprep.subr.bf16.mxu1 %v3263_v42  ;;  %v1046_v49 = vsel %vm616_vm8, %v1038_v45, %v2733_v12  ;;  %v3289_v52 = vld [vmem:[#allocation30_spill] sm:$0xff] }
 0x200   :  { %v1023_v61 = vsel %vm589_vm5, %v1015_v47, %v2772_v23  ;;  %v982_v1 = vpop.permute.xlu1 %981  ;;  %v2993_v16 = vmul.f32 %v1046_v49, %v2749_v26  ;;  %v3275_v23 = vld [vmem:[#allocation22_spill] sm:$0xff]  ;;  %v3290_v47 = vld [vmem:[#allocation31_spill] sm:$0xff] }
 0x201   :  { %v1031_v51 = vsel %vm598_vm6, %v1023_v61, %v2776_v35  ;;  %v1000_v20 = vsel %vm562_vm2, %v982_v1, %v2510_v60  ;;  %v3279_v60 = vld [vmem:[#allocation20_spill] sm:$0xff]  ;;  %v3291_v61 = vld [vmem:[#allocation33_spill] sm:$0xff] }
 0x202   :  { %v1008_v55 = vsel %vm571_vm3, %v1000_v20, %v2761_v11  ;;  %v2161_v12 = vpack.c.bf16 %v2993_v16, %v2990_v15  ;;  %v1039_v14 = vsel %vm607_vm7, %v1031_v51, %v3275_v23  ;;  %v3292_v51 = vld [vmem:[#allocation36_spill] sm:$0xff] }
 0x203   :  { %v1016_v18 = vsel %vm580_vm4, %v1008_v55, %v3276_v53  ;;  %v1047_v56 = vsel %vm616_vm8, %v1039_v14, %v3277_v25 }
 0x204   :  { %v1024_v35 = vsel %vm589_vm5, %v1016_v18, %v3278_v21  ;;  %v984_v43 = vpop.permute.xlu1 %983  ;;  %v1055_v41 = vmul.f32 %v1047_v56, %v2810_v32  ;;  %v3058_v56 = vpack.c.bf16 %v2749_v26, %v2751_v27  ;;  %v3063_v21 = vpack.c.bf16 %v2808_v33, %v2810_v32 }
 0x205   :  { %v1032_v3 = vsel %vm598_vm6, %v1024_v35, %v3279_v60  ;;  %v1001_v11 = vsel %vm562_vm2, %v984_v43, %v2524_v63  ;;  %v3069_v35 = vpack.c.bf16 %v2874_v38, %v2876_v22 }
 0x206   :  { %v1009_v34 = vsel %vm571_vm3, %v1001_v11, %v3280_v10  ;;  %v1040_v5 = vsel %vm607_vm7, %v1032_v3, %v3281_v13  ;;  %v3293_v10 = vld [vmem:[#allocation8_spill] sm:$0xff] }
 0x207   :  { %v1017_v7 = vsel %vm580_vm4, %v1009_v34, %v3282_v30  ;;  %v1048_v59 = vsel %vm616_vm8, %v1040_v5, %v3283_v8  ;;  %v3294_v34 = vld [vmem:[#allocation9_spill] sm:$0xff]  ;;  %v3295_v5 = vld [vmem:[#allocation10_spill] sm:$0xff]  ;;  %v3296_v30 = vld [vmem:[#allocation11_spill] sm:$0xff] }
 0x208   :  { %v1025_v28 = vsel %vm589_vm5, %v1017_v7, %v2835_v54  ;;  %v986_v17 = vpop.permute.xlu1 %985  ;;  %v1056_v63 = vmul.f32 %v1048_v59, %v2808_v33  ;;  %v2265_v13 = vpack.i.bf16 %v3294_v34, %v3293_v10  ;;  %v2270_v7 = vpack.i.bf16 %v3296_v30, %v3295_v5  ;;  %v3297_v8 = vld [vmem:[#allocation12_spill] sm:$0xff]  ;;  %v3298_v59 = vld [vmem:[#allocation13_spill] sm:$0xff] }
 0x209   :  { %v1033_v46 = vsel %vm598_vm6, %v1025_v28, %v3284_v2  ;;  %v1002_v4 = vsel %vm562_vm2, %v986_v17, %v3285_v6  ;;  %v2275_v28 = vpack.i.bf16 %v3298_v59, %v3297_v8  ;;  %v3299_v17 = vld [vmem:[#allocation14_spill] sm:$0xff] }
 0x20a   :  { %v1010_v57 = vsel %vm571_vm3, %v1002_v4, %v3286_v29  ;;  %v2164_v50 = vpack.c.bf16 %v1056_v63, %v1055_v41  ;;  %v1041_v40 = vsel %vm607_vm7, %v1033_v46, %v3287_v58  ;;  %2271 = vrot.lane.b32.xlu1 %v2270_v7, %s2364_s2  ;;  %v3300_v41 = vld [vmem:[#allocation15_spill] sm:$0xff] }
 0x20b   :  { %v1018_v54 = vsel %vm580_vm4, %v1010_v57, %v3288_v9  ;;  %v1049_v19 = vsel %vm616_vm8, %v1041_v40, %v2859_v39  ;;  %v3051_v39 = vpack.c.bf16 %v2695_v37, %v2693_v36  ;;  %v2280_v63 = vpack.i.bf16 %v3300_v41, %v3299_v17  ;;  %v3301_v29 = vld [vmem:[#allocation27_spill] sm:$0xff] }
 0x20c   :  { %v1026_v45 = vsel %vm589_vm5, %v1018_v54, %v3289_v52  ;;  %v1057_v55 = vmul.f32 %v1049_v19, %v2876_v22  ;;  %v1213_v57 = vmul.f32 %v3301_v29, %v2693_v36  ;;  %v1214_v0 = vmul.f32 %v3301_v29, %v2695_v37 }
 0x20d   :  { %v1034_v49 = vsel %vm598_vm6, %v1026_v45, %v3290_v47  ;;  %2123 = vmatpush3.bf16.msra.mxu0 %v3051_v39  ;;  %v1215_v15 = vmul.f32 %v3301_v29, %v2751_v27  ;;  %v1216_v16 = vmul.f32 %v3301_v29, %v2749_v26  ;;  %v1217_v45 = vmul.f32 %v3301_v29, %v2810_v32 }
 0x20e   :  { %v1042_v1 = vsel %vm607_vm7, %v1034_v49, %v3291_v61  ;;  %2124 = vmatprep.subr.bf16.mxu0 %v3263_v42  ;;  %v2182_v58 = vpack.c.bf16 %v1214_v0, %v1213_v57  ;;  %v1218_v47 = vmul.f32 %v3301_v29, %v2808_v33 }
 0x20f   :  { %v1050_v20 = vsel %vm616_vm8, %v1042_v1, %v3292_v51  ;;  %v2185_v52 = vpack.c.bf16 %v1216_v16, %v1215_v15  ;;  %v2285_v15 = vpack.i.bf16 %v2695_v37, %v2693_v36  ;;  %v3303_v16 = vld [vmem:[#allocation35_spill] sm:$0xff] }
 0x210   :  { %v1058_v23 = vmul.f32 %v1050_v20, %v2874_v38 }
 0x211   :  { %2126 = vmatpush3.bf16.msra.mxu0 %v3058_v56 }
 0x212   :  { %v2167_v14 = vpack.c.bf16 %v1058_v23, %v1057_v55  ;;  %2127 = vmatprep.subr.bf16.mxu0 %v3263_v42  ;;  %v2188_v55 = vpack.c.bf16 %v1218_v47, %v1217_v45  ;;  %v1219_v23 = vmul.f32 %v3301_v29, %v2876_v22 }
 0x215   :  { %2129 = vmatpush3.bf16.msra.mxu0 %v3063_v21 }
 0x216   :  { %2130 = vmatprep.subr.bf16.mxu0 %v3263_v42 }
 0x219   :  { %2132 = vmatpush3.bf16.msra.mxu0 %v3069_v35 }
 0x21a   :  { %2145 = vmatprep.subr.bf16.mxu0 %v3263_v42 }
 0x2c4   :  { %v702_v53 = vpop.f32.mrb[2].mxu1 }
 0x2c5   :  { %v1897_v18 = vpop.f32.mrb[3].mxu1  ;;  %v706_v25 = vsel %vm52_vm0, %v702_v53, -inf }
 0x2c6   :  { %707 = vmax.xlane.f32.xlu0 %v706_v25 }
 0x2dc   :  { %2266 = vrot.lane.b32.xlu0 %v2265_v13, %s2364_s2  ;;  %v2311_v13 = vld [vmem:[%s3207_s0] sm:$0xff] }
 0x2e0   :  { %2276 = vrot.lane.b32.xlu0 %v2275_v28, %s2364_s2 }
 0x2e4   :  { %2281 = vrot.lane.b32.xlu0 %v2280_v63, %s2364_s2 }
 0x2e8   :  { %967 = vrot.lane.b32.xlu0 %v2893_v24, %s2364_s2 }
 0x353   :  { %v708_v43 = vpop.xlane.xlu0 %707 }
 0x354   :  { %v709_v60 = vsub.f32 %v702_v53, %v708_v43 }
 0x356   :  { %v710_v3 = vmul.f32 1.442695, %v709_v60 }
 0x358   :  { %2295 = vpow2.f32 %v710_v3 }
 0x362   :  { %v2296_v11 = vpop.eup %2295 }
 0x363   :  { %1915 = vmatmul.mubr.msk.f32.vlgmr.msra.gmra.mrb[10].mxu0 %vm52_vm0, %v2296_v11 }
 0x364   :  { %1952 = vmatprep.mubr.msk.f32.mxu0 %vm2372_vm1, %v3274_v62 }
 0x436   :  { %v781_v2 = vpop.f32.mrb[10].mxu0 }
 0x437   :  { %2297 = vrcp.f32 %v781_v2  ;;  %v1916_v46 = vpop.f32.mrb[11].mxu0 }
 0x441   :  { %v2298_v6 = vpop.eup %2297 }
 0x442   :  { %v786_v4 = vmul.f32 %v2298_v6, %v2296_v11 }
 0x444   :  { %1934 = vmatmul.mubr.msk.f32.vlgmr.msra.gmra.mrb[4].mxu1 %vm52_vm0, %v786_v4  ;;  %v2312_v4 = vld [vmem:[%s3207_s0 + $0x8] sm:$0xff]  ;;  %s2375_s0 = smov 96  }
 0x445   :  { %2159 = vmatpush3.bf16.msra.mxu1 %v2158_v48  ;;  %1971 = vmatprep.mubr.msk.f32.mxu1 %vm2372_vm1, %v3274_v62  ;;  %v131_v48 = vadd.f32 %v3302_v44, %v2893_v24 }
 0x446   :  { %2160 = vmatprep.subr.bf16.mxu1 %v3263_v42 }
 0x449   :  { %2162 = vmatpush3.bf16.msra.mxu1 %v2161_v12  ;;  %v2267_v12 = vpop.permute.xlu0 %2266 }
 0x44a   :  { %2163 = vmatprep.subr.bf16.mxu1 %v3263_v42  ;;  %v2269_v40 = vunpack.i.h.bf16 %v2267_v12  ;;  %v2268_v9 = vunpack.i.l.bf16 %v2267_v12  ;;  %v1398_v12 = vsub.s32 1, %v3303_v16 }
 0x44c   :  { %v2146_v49 = vpack.c.bf16 %v2269_v40, %v2268_v9  ;;  %v2290_v40 = vpack.i.bf16 %v2749_v26, %v2751_v27 }
 0x44d   :  { %2165 = vmatpush3.bf16.msra.mxu1 %v2164_v50  ;;  %v2272_v50 = vpop.permute.xlu1 %2271  ;;  %v2277_v61 = vpop.permute.xlu0 %2276 }
 0x44e   :  { %2166 = vmatprep.subr.bf16.mxu1 %v3263_v42  ;;  %v2274_v54 = vunpack.i.h.bf16 %v2272_v50  ;;  %v2273_v19 = vunpack.i.l.bf16 %v2272_v50  ;;  %2147 = vmatpush3.bf16.msra.mxu0 %v2146_v49  ;;  %v2279_v51 = vunpack.i.h.bf16 %v2277_v61  ;;  %v2278_v20 = vunpack.i.l.bf16 %v2277_v61 }
 0x44f   :  { %2148 = vmatprep.subr.bf16.mxu0 %v3263_v42  ;;  %v3166_v50 = vrot.slane %v2878_v31, %v1398_v12 }
 0x450   :  { %v2149_v1 = vpack.c.bf16 %v2274_v54, %v2273_v19  ;;  %v2152_v33 = vpack.c.bf16 %v2279_v51, %v2278_v20  ;;  %v1514_v20 = vld [vmem:[#allocation2 + $0xc0] sm:$0xff] }
 0x451   :  { %2168 = vmatpush3.bf16.msra.mxu1 %v2167_v14  ;;  %v1220_v14 = vmul.f32 %v3301_v29, %v2874_v38  ;;  %v2282_v32 = vpop.permute.xlu0 %2281 }
 0x452   :  { %2181 = vmatprep.subr.bf16.mxu1 %v3263_v42  ;;  %2150 = vmatpush3.bf16.msra.mxu0 %v2149_v1  ;;  %v2284_v53 = vunpack.i.h.bf16 %v2282_v32  ;;  %v2283_v18 = vunpack.i.l.bf16 %v2282_v32 }
 0x453   :  { %v2191_v25 = vpack.c.bf16 %v1220_v14, %v1219_v23  ;;  %2151 = vmatprep.subr.bf16.mxu0 %v3263_v42 }
 0x454   :  { %1972 = vmatmul.mubr.msk.f32.vlgmr.msra.gmra.mrb[6].mxu1 %vm52_vm0, %v131_v48  ;;  %v2155_v43 = vpack.c.bf16 %v2284_v53, %v2283_v18 }
 0x455   :  { %2183 = vmatpush3.bf16.msra.mxu1 %v2182_v58  ;;  %2009 = vmatprep.mubr.msk.f32.mxu1 %vm2372_vm1, %v3274_v62 }
 0x456   :  { %2184 = vmatprep.subr.bf16.mxu1 %v3263_v42  ;;  %2153 = vmatpush3.bf16.msra.mxu0 %v2152_v33 }
 0x457   :  { %2154 = vmatprep.subr.bf16.mxu0 %v3263_v42 }
 0x459   :  { %2186 = vmatpush3.bf16.msra.mxu1 %v2185_v52 }
 0x45a   :  { %2187 = vmatprep.subr.bf16.mxu1 %v3263_v42  ;;  %2156 = vmatpush3.bf16.msra.mxu0 %v2155_v43 }
 0x45b   :  { %2169 = vmatprep.subr.bf16.mxu0 %v3263_v42 }
 0x45d   :  { %2189 = vmatpush3.bf16.msra.mxu1 %v2188_v55  ;;  %v1515_v55 = vld [vmem:[#allocation2 + $0xc8] sm:$0xff] }
 0x45e   :  { %2190 = vmatprep.subr.bf16.mxu1 %v3263_v42  ;;  %v2213_v23 = vpack.c.bf16 %v1515_v55, %v1514_v20 }
 0x461   :  { %2192 = vmatpush3.bf16.msra.mxu1 %v2191_v25 }
 0x517   :  { %v864_v38 = vpop.f32.mrb[4].mxu1 }
 0x518   :  { %v1935_v22 = vpop.f32.mrb[5].mxu1  ;;  %1953 = vmatmul.mubr.msk.f32.vlgmr.msra.gmra.mrb[12].mxu0 %vm52_vm0, %v864_v38 }
 0x519   :  { %2171 = vmatpush3.bf16.msra.mxu0 %v3051_v39  ;;  %1990 = vmatprep.mubr.msk.f32.mxu0 %vm2372_vm1, %v3274_v62 }
 0x51a   :  { %2172 = vmatprep.subr.bf16.mxu0 %v3263_v42 }
 0x51d   :  { %2174 = vmatpush3.bf16.msra.mxu0 %v3058_v56 }
 0x51e   :  { %2175 = vmatprep.subr.bf16.mxu0 %v3263_v42 }
 0x521   :  { %2177 = vmatpush3.bf16.msra.mxu0 %v3063_v21 }
 0x522   :  { %2178 = vmatprep.subr.bf16.mxu0 %v3263_v42 }
 0x525   :  { %2180 = vmatpush3.bf16.msra.mxu0 %v3069_v35  ;;  %v968_v35 = vpop.permute.xlu0 %967 }
 0x526   :  { %2193 = vmatprep.subr.bf16.mxu0 %v3263_v42 }
 0x527   :  { %v1128_v60 = vpop.f32.mrb[6].mxu1 }
 0x528   :  { %v1973_v3 = vpop.f32.mrb[7].mxu1  ;;  %v1132_v39 = vsel %vm52_vm0, %v1128_v60, -inf }
 0x529   :  { %1133 = vmax.xlane.f32.xlu1 %v1132_v39 }
 0x5b6   :  { %v1134_v11 = vpop.xlane.xlu1 %1133 }
 0x5b7   :  { %v1135_v10 = vsub.f32 %v1128_v60, %v1134_v11  ;;  %v1516_v11 = vld [vmem:[#allocation2 + $0xd0] sm:$0xff] }
 0x5b9   :  { %v1136_v34 = vmul.f32 1.442695, %v1135_v10  ;;  %v1517_v10 = vld [vmem:[#allocation2 + $0xd8] sm:$0xff] }
 0x5bb   :  { %2299 = vpow2.f32 %v1136_v34 }
 0x5c5   :  { %v2300_v56 = vpop.eup %2299 }
 0x5c6   :  { %1991 = vmatmul.mubr.msk.f32.vlgmr.msra.gmra.mrb[14].mxu0 %vm52_vm0, %v2300_v56 }
 0x5c7   :  { %2195 = vmatpush3.bf16.msra.mxu0 %v2146_v49  ;;  %2028 = vmatprep.mubr.msk.f32.mxu0 %vm2372_vm1, %v3274_v62 }
 0x5c8   :  { %2196 = vmatprep.subr.bf16.mxu0 %v3263_v42 }
 0x5cb   :  { %2198 = vmatpush3.bf16.msra.mxu0 %v2149_v1 }
 0x5cc   :  { %2199 = vmatprep.subr.bf16.mxu0 %v3263_v42 }
 0x5cf   :  { %2201 = vmatpush3.bf16.msra.mxu0 %v2152_v33 }
 0x5d0   :  { %2202 = vmatprep.subr.bf16.mxu0 %v3263_v42 }
 0x5d3   :  { %2204 = vmatpush3.bf16.msra.mxu0 %v2155_v43 }
 0x5eb   :  { %v961_v21 = vpop.f32.mrb[12].mxu0 }
 0x5ec   :  { %v965_v5 = vadd.f32 %v2311_v13, %v961_v21  ;;  %v1954_v30 = vpop.f32.mrb[13].mxu0  ;;  %v2217_v21 = vpack.c.bf16 %v1517_v10, %v1516_v11  ;;  %v1519_v13 = vld [vmem:[#allocation2 + $0xe8] sm:$0xff] }
 0x5ed   :  { %v1520_v30 = vld [vmem:[#allocation2 + $0xf0] sm:$0xff] }
 0x5ee   :  { %v970_v7 = vadd.f32 %v968_v35, %v965_v5 }
 0x5f0   :  { %v1369_v62 = vsel %vm589_vm5, %v970_v7, 0.0 }
 0x5f1   :  { %1370 = vadd.xlane.f32.xlu0 %v1369_v62 }
 0x607   :  { %2291 = vrot.lane.b32.xlu0 %v2290_v40, %s2364_s2 }
 0x67e   :  { %v1371_v63 = vpop.xlane.xlu0 %1370 }
 0x67f   :  { %v1376_v2 = vmul.f32 0.03125, %v1371_v63 }
 0x681   :  { %v1378_v6 = vsub.f32 %v970_v7, %v1376_v2  ;;  %v1521_v7 = vld [vmem:[#allocation2 + $0xf8] sm:$0xff] }
 0x682   :  { %v2292_v26 = vpop.permute.xlu0 %2291  ;;  %v2225_v62 = vpack.c.bf16 %v1521_v7, %v1520_v30 }
 0x683   :  { %v1380_v48 = vmul.f32 %v1378_v6, %v1378_v6  ;;  %v2294_v27 = vunpack.i.h.bf16 %v2292_v26  ;;  %v2293_v1 = vunpack.i.l.bf16 %v2292_v26 }
 0x685   :  { %v1382_v58 = vsel %vm589_vm5, %v1380_v48, 0.0  ;;  %v2209_v51 = vpack.c.bf16 %v2294_v27, %v2293_v1 }
 0x699   :  { %v1207_v8 = vpop.f32.mrb[14].mxu0 }
 0x69a   :  { %2301 = vrcp.f32 %v1207_v8  ;;  %v1992_v59 = vpop.f32.mrb[15].mxu0 }
 0x6a4   :  { %v2302_v28 = vpop.eup %2301 }
 0x6a5   :  { %v1212_v17 = vmul.f32 %v2302_v28, %v2300_v56 }
 0x6a7   :  { %2010 = vmatmul.mubr.msk.f32.vlgmr.msra.gmra.mrb[8].mxu1 %vm52_vm0, %v1212_v17 }
 0x77a   :  { %v1290_v42 = vpop.f32.mrb[8].mxu1 }
 0x77b   :  { %v2011_v41 = vpop.f32.mrb[9].mxu1  ;;  %2029 = vmatmul.mubr.msk.f32.vlgmr.msra.gmra.mrb[16].mxu0 %vm52_vm0, %v1290_v42 }
 0x84e   :  { %v1363_v46 = vpop.f32.mrb[16].mxu0 }
 0x84f   :  { %v1367_v29 = vadd.f32 %v2312_v4, %v1363_v46  ;;  %v2030_v57 = vpop.f32.mrb[17].mxu0 }
 0x851   :  { %v1368_v0 = vadd.f32 %v1367_v29, %v968_v35  ;;  %v1518_v35 = vld [vmem:[#allocation2 + $0xe0] sm:$0xff] }
 0x852   :  { %v2221_v5 = vpack.c.bf16 %v1519_v13, %v1518_v35 }
 0x853   :  { %v1372_v44 = vsel %vm589_vm5, %v1368_v0, 0.0 }
 0x854   :  { %1373 = vadd.xlane.f32.xlu1 %v1372_v44 }
 0x858   :  { %1383 = vadd.xlane.f32.xlu1 %v1382_v58 }
 0x869   :  { %2286 = vrot.lane.b32.xlu1 %v2285_v15, %s2364_s2 }
 0x86d   :  { %1401 = vrot.lane.b32.xlu1 %v3166_v50, %s2364_s2  ;;  %s2376_s2 = smov [#allocation5]  }
 0x86e   :  { %s1653_s4 = sshll.u32 %s2376_s2, 4  ;;  %s1654_s4 = int_to_ptr.vmem [resolvable:$true] %s1653_s4 }
 0x86f   :  { %s2335_s5 = scalar_lea.vmem %s1654_s4, 256  ;;  %p2340_p9 = scmp.lt.s32.totalorder %s1654_s4, %s1654_s4 }
 0x870   :  { %p2336_p8 = scmp.ne.s32.totalorder %s1654_s4, %s2335_s5  ;;  %p2341_p10 = scmp.lt.s32.totalorder %s2335_s5, %s2335_s5 }
 0x872   :  { %p2342_p11 = por %p2341_p10, %p2340_p9 }
 0x874   :  { %p2343_p12 = pnand %p2342_p11, %p2336_p8 }
 0x8e1   :  { %v1374_v9 = vpop.xlane.xlu1 %1373 }
 0x8e2   :  { %v1377_v54 = vmul.f32 0.03125, %v1374_v9 }
 0x8e4   :  { %v1379_v19 = vsub.f32 %v1368_v0, %v1377_v54 }
 0x8e5   :  { %v1384_v52 = vpop.xlane.xlu1 %1383 }
 0x8e6   :  { %v1381_v36 = vmul.f32 %v1379_v19, %v1379_v19  ;;  %v1388_v14 = vmul.f32 0.03125, %v1384_v52 }
 0x8e8   :  { %v1385_v37 = vsel %vm589_vm5, %v1381_v36, 0.0  ;;  %v1390_v32 = vadd.f32 1e-05, %v1388_v14  ;;  %v1636_v36 = vsub.s32 2, %v3303_v16 }
 0x8e9   :  { %1386 = vadd.xlane.f32.xlu1 %v1385_v37  ;;  %v2287_v45 = vpop.permute.xlu1 %2286 }
 0x8ea   :  { %v2289_v47 = vunpack.i.h.bf16 %v2287_v45  ;;  %v2288_v49 = vunpack.i.l.bf16 %v2287_v45  ;;  %2303 = vrsqrt.f32 %v1390_v32  ;;  %v1637_v37 = vrot.slane %v2878_v31, %v1636_v36 }
 0x8ec   :  { %v2205_v61 = vpack.c.bf16 %v2289_v47, %v2288_v49 }
 0x8ed   :  { %v1402_v53 = vpop.permute.xlu1 %1401 }
 0x8ee   :  { %2206 = vmatprep.subr.bf16.mxu1 %v2205_v61 }
 0x8ef   :  { %2208 = vmatpush3.bf16.msra.mxu1 %v2205_v61 }
 0x8f0   :  { %2210 = vmatprep.subr.bf16.mxu1 %v2209_v51 }
 0x8f3   :  { %2212 = vmatpush3.bf16.msra.mxu1 %v2209_v51 }
 0x8f4   :  { %2214 = vmatprep.subr.bf16.mxu1 %v2213_v23  ;;  %v2304_v33 = vpop.eup %2303 }
 0x8f5   :  { %v1394_v18 = vmul.f32 %v2304_v33, %v1378_v6 }
 0x8f7   :  { %v1404_v38 = vmul.f32 %v1402_v53, %v1394_v18 }
 0x8fa   :  { %1406 = vrot.lane.b32.xlu1 %v3166_v50, %s2370_s25 }
 0x8fe   :  { %1522 = vrot.lane.b32.xlu1 %v2893_v24, %s2370_s25 }
 0x976   :  { %v1387_v25 = vpop.xlane.xlu1 %1386 }
 0x977   :  { %v1389_v43 = vmul.f32 0.03125, %v1387_v25 }
 0x979   :  { %v1391_v24 = vadd.f32 1e-05, %v1389_v43 }
 0x97a   :  { %v1407_v22 = vpop.permute.xlu1 %1406 }
 0x97b   :  { %2305 = vrsqrt.f32 %v1391_v24  ;;  %v1409_v60 = vadd.f32 %v1407_v22, %v1404_v38 }
 0x97d   :  { %2039 = vmatprep.mubr.msk.f32.mxu1 %vm589_vm5, %v1409_v60 }
 0x97e   :  { %v1523_v63 = vpop.permute.xlu1 %1522 }
 0x985   :  { %v2306_v3 = vpop.eup %2305 }
 0x986   :  { %v1395_v39 = vmul.f32 %v2306_v3, %v1379_v19 }
 0x988   :  { %v1405_v34 = vmul.f32 %v1402_v53, %v1395_v39 }
 0x98a   :  { %v1410_v56 = vadd.f32 %v1407_v22, %v1405_v34 }
 0x98c   :  { %2040 = vmatmul.mubr.msk.f32.vlgmr.msra.gmra.mrb[10].mxu1 %vm589_vm5, %v1410_v56 }
 0x98d   :  { %2216 = vmatpush3.bf16.msra.mxu1 %v2213_v23 }
 0x98e   :  { %2218 = vmatprep.subr.bf16.mxu1 %v2217_v21 }
 0x991   :  { %2220 = vmatpush3.bf16.msra.mxu1 %v2217_v21 }
 0x992   :  { %2222 = vmatprep.subr.bf16.mxu1 %v2221_v5 }
 0x995   :  { %2224 = vmatpush3.bf16.msra.mxu1 %v2221_v5 }
 0x996   :  { %2226 = vmatprep.subr.bf16.mxu1 %v2225_v62 }
 0x999   :  { %2228 = vmatpush3.bf16.msra.mxu1 %v2225_v62 }
 0xa5f   :  { %v2041_v8 = vpop.f32.mrb[10].mxu1 }
 0xa60   :  { %v1509_v59 = vadd.f32 %v2041_v8, %v3166_v50  ;;  %v1503_v28 = vpop.f32.mrb[11].mxu1 }
 0xa61   :  { %v1504_v17 = vadd.f32 %v1503_v28, %v3166_v50 }
 0xa62   :  { %v1513_v41 = vmax.f32 %v1509_v59, 0.0 }
 0xa63   :  { %v1512_v42 = vmax.f32 %v1504_v17, 0.0 }
 0xa65   :  { %2058 = vmatprep.mubr.msk.f32.mxu1 %vm52_vm0, %v1512_v42 }
 0xa66   :  { %2059 = vmatmul.mubr.msk.f32.vlgmr.msra.gmra.mrb[12].mxu1 %vm52_vm0, %v1513_v41 }
 0xb39   :  { %v2060_v2 = vpop.f32.mrb[12].mxu1 }
 0xb3a   :  { %v1603_v46 = vadd.f32 %v2060_v2, %v1523_v63  ;;  %v1597_v6 = vpop.f32.mrb[13].mxu1 }
 0xb3b   :  { %v1598_v4 = vadd.f32 %v1597_v6, %v1523_v63 }
 0xb3c   :  { %v1607_v29 = vadd.f32 %v1603_v46, %v1410_v56 }
 0xb3d   :  { %v1606_v57 = vadd.f32 %v1598_v4, %v1409_v60 }
 0xb3e   :  { %v1611_v0 = vsel %vm589_vm5, %v1607_v29, 0.0 }
 0xb3f   :  { %1612 = vadd.xlane.f32.xlu0 %v1611_v0  ;;  %v1608_v44 = vsel %vm589_vm5, %v1606_v57, 0.0 }
 0xb40   :  { %1609 = vadd.xlane.f32.xlu1 %v1608_v44 }
 0xbcc   :  { %v1613_v48 = vpop.xlane.xlu0 %1612 }
 0xbcd   :  { %v1615_v58 = vmul.f32 0.03125, %v1613_v48  ;;  %v1610_v15 = vpop.xlane.xlu1 %1609 }
 0xbce   :  { %v1614_v12 = vmul.f32 0.03125, %v1610_v15 }
 0xbcf   :  { %v1617_v50 = vsub.f32 %v1607_v29, %v1615_v58 }
 0xbd0   :  { %v1616_v40 = vsub.f32 %v1606_v57, %v1614_v12 }
 0xbd1   :  { %v1619_v9 = vmul.f32 %v1617_v50, %v1617_v50 }
 0xbd2   :  { %v1618_v54 = vmul.f32 %v1616_v40, %v1616_v40 }
 0xbd3   :  { %v1623_v19 = vsel %vm589_vm5, %v1619_v9, 0.0 }
 0xbd4   :  { %1624 = vadd.xlane.f32.xlu1 %v1623_v19  ;;  %v1620_v52 = vsel %vm589_vm5, %v1618_v54, 0.0 }
 0xbd5   :  { %1621 = vadd.xlane.f32.xlu0 %v1620_v52 }
 0xbeb   :  { %1641 = vrot.lane.b32.xlu0 %v1637_v37, %s2375_s0 }
 0xc61   :  { %v1625_v45 = vpop.xlane.xlu1 %1624 }
 0xc62   :  { %v1627_v47 = vmul.f32 0.03125, %v1625_v45  ;;  %v1622_v49 = vpop.xlane.xlu0 %1621 }
 0xc63   :  { %v1626_v61 = vmul.f32 0.03125, %v1622_v49 }
 0xc64   :  { %v1629_v26 = vadd.f32 1e-05, %v1627_v47 }
 0xc65   :  { %v1628_v27 = vadd.f32 1e-05, %v1626_v61 }
 0xc66   :  { %2307 = vrsqrt.f32 %v1629_v26  ;;  %v1642_v23 = vpop.permute.xlu0 %1641 }
 0xc67   :  { %2309 = vrsqrt.f32 %v1628_v27 }
 0xc70   :  { %v2308_v1 = vpop.eup %2307 }
 0xc71   :  { %v2310_v51 = vpop.eup %2309  ;;  %v1633_v20 = vmul.f32 %v2308_v1, %v1617_v50 }
 0xc72   :  { %v1632_v55 = vmul.f32 %v2310_v51, %v1616_v40 }
 0xc73   :  { %v1639_v14 = vmul.f32 %v1637_v37, %v1633_v20 }
 0xc74   :  { %v1638_v16 = vmul.f32 %v1637_v37, %v1632_v55 }
 0xc75   :  { %v1645_v31 = vadd.f32 %v1642_v23, %v1639_v14 }
 0xc76   :  { %v1644_v32 = vadd.f32 %v1642_v23, %v1638_v16 }
 0xc77   :  { %1647 = vst.msk [vmem:[#allocation5 + $0x8] sm:$0xff] %vm589_vm5, %v1645_v31 }
 0xc78   :  { %1646 = vst.msk [vmem:[#allocation5] sm:$0xff] %vm589_vm5, %v1644_v32 }
 0xc79   :  { %2346 = shalt.err (!%p2343_p12)
}
 0xc7a   :  { %s2347_s8 = scalar_lea.hbm %s3210_s3, 256 }
 0xc7b   :  { %p2348_p13 = scmp.ne.s32.totalorder %s3210_s3, %s2347_s8  ;;  %p2351_p0 = scmp.lt.u32.totalorder %s2347_s8, %s3210_s3 }
 0xc7d   :  { %p2353_p1 = pnand %p2351_p0, %p2348_p13 }
 0xc7f   :  { %2356 = shalt.err (!%p2353_p1)
}
 0xc80   :  { %1659 = dma.vmem_to_hbm [thread:$0]  %s1654_s4, 256, %s3210_s3, [#allocation4], %s2362_s22, %s2362_s22, %s2363_s23  }
 0xc81   :  { %2359 = dma.done.wait [#allocation4], 256  }
 0xc82   :  { %2360 = vsyncadd [#allocation4], 4294967040 }
 0xc83   :  { %1663 = vsyncpa [#allocation3], 1 }
 0xc84   :  { %1664 = vsyncpa [#allocation4], 1 }

</bundles_post_ra>
